<compile_context>
chip_gen: v6e
topology: v6e:2x2x1
jax: 0.10.0
libtpu: 0.0.40
codegen_flags: <defaults>
</compile_context>

<pallas_src>
import functools
import math

import jax
import jax.numpy as jnp
from jax import lax
from jax.experimental import pallas as pl
from jax.experimental.pallas import tpu as pltpu


def _dilconv_kernel(x_ref, wdw_ref, wpw_ref, shift_ref, o_ref,
                    xpad_ref, dw_ref, *,
                    kernel_size, stride, padding, dilation, h_tile, w_out):
    """Fused ReLU + depthwise dilated conv + 1x1 conv (MXU) + BN, one row-tile.

    x_ref:     VMEM (C_in, H, W)            unpadded input sample
    wdw_ref:   SMEM (K*K*C_in,)             depthwise taps, tap-major scalars
    wpw_ref:   VMEM (C_out, C_in)           pointwise weights (BN scale folded)
    shift_ref: VMEM (C_out, 1)              BN shift
    o_ref:     VMEM (C_out, th*W_out)       lane-dense flattened output tile
    xpad_ref:  VMEM (C_in, H_pad, W_pad)    scratch: ReLU'd zero-padded sample
    dw_ref:    VMEM (C_in, th, W_out)       scratch: depthwise results
    """
    c_in, h, w = x_ref.shape
    k = kernel_size
    j = pl.program_id(1)

    # --- ReLU + zero-pad into VMEM scratch, once per sample. ----------------
    # The input block index is constant along the h-tile grid axis, so the
    # sample stays resident and this fill only runs on the first tile.
    @pl.when(j == 0)
    def _():
        xpad_ref[...] = jnp.zeros_like(xpad_ref)
        xr = jnp.maximum(x_ref[...], 0)
        if xr.dtype != jnp.float32:
            xr = xr.astype(jnp.float32)
        xpad_ref[:, padding:padding + h, padding:padding + w] = xr

    # --- Depthwise dilated conv for this row tile -> dw_ref ------------------
    rows_needed = (h_tile - 1) * stride + dilation * (k - 1) + 1
    row0 = pl.multiple_of(j * (h_tile * stride), h_tile * stride)

    def dw_body(ci, carry):
        xc = xpad_ref[ci, pl.ds(row0, rows_needed), :]        # (rows, W_pad) f32
        if stride == 1:
            phases = (xc,)
        else:
            # De-interleave columns once so every tap below reads a contiguous
            # lane window instead of a per-tap lane-strided slice.
            phases = tuple(xc[:, p::stride] for p in range(stride))
        acc = None
        for kh in range(k):
            h0 = kh * dilation
            rows = slice(h0, h0 + (h_tile - 1) * stride + 1, stride)
            for kw in range(k):
                w0 = kw * dilation
                win = phases[w0 % stride][rows,
                                          (w0 // stride):(w0 // stride) + w_out]
                tap = win * wdw_ref[(kh * k + kw) * c_in + ci]  # scalar FMA (VPU)
                acc = tap if acc is None else acc + tap
        dw_ref[ci] = acc
        return carry

    lax.fori_loop(0, c_in, dw_body, 0, unroll=math.gcd(c_in, 8))

    # --- Pointwise 1x1 conv (BN scale pre-folded) on the MXU + BN shift. ----
    dw_mat = dw_ref[...].reshape(c_in, h_tile * w_out)
    y = jnp.dot(wpw_ref[...], dw_mat, preferred_element_type=jnp.float32)
    o_ref[...] = (y + shift_ref[...]).astype(o_ref.dtype)


def _pick_h_tile(h_out, w_out):
    """Largest row-tile whose flattened size is lane-dense (mult. of 128),
    preferring >= 2 tiles so the h-tile grid axis provides pipeline depth."""
    divisors = [t for t in range(1, h_out + 1) if h_out % t == 0]
    lane_dense = [t for t in divisors if (t * w_out) % 128 == 0]
    multi = [t for t in lane_dense if t < h_out]
    if multi:
        return max(multi)
    if lane_dense:
        return max(lane_dense)
    return h_out


def dilconv_forward(x, w_dw, w_pw, bn_gamma, bn_beta, bn_mean, bn_var, *,
                    kernel_size, stride, padding, dilation, eps=1e-5):
    """Pallas implementation of DilConv.forward (NCHW, inference-mode BN)."""
    n, c_in, h, w = x.shape
    c_out = w_pw.shape[0]
    k = kernel_size
    h_out = (h + 2 * padding - dilation * (k - 1) - 1) // stride + 1
    w_out = (w + 2 * padding - dilation * (k - 1) - 1) // stride + 1
    h_pad = h + 2 * padding
    w_pad = w + 2 * padding
    h_tile = _pick_h_tile(h_out, w_out)
    n_tiles = h_out // h_tile

    # Depthwise taps, tap-major, flattened 1-D for compact SMEM padding.
    w_dw_flat = jnp.transpose(
        w_dw.reshape(c_in, k * k), (1, 0)).reshape(-1).astype(jnp.float32)

    # Fold BN (inference form) into the pointwise weights + per-row shift.
    scale = (bn_gamma / jnp.sqrt(bn_var + eps)).astype(jnp.float32)
    w_pw_scaled = w_pw.reshape(c_out, c_in).astype(jnp.float32) * scale[:, None]
    shift = (bn_beta.astype(jnp.float32)
             - bn_mean.astype(jnp.float32) * scale).reshape(c_out, 1)

    kernel = functools.partial(
        _dilconv_kernel, kernel_size=k, stride=stride, padding=padding,
        dilation=dilation, h_tile=h_tile, w_out=w_out)

    flops = 2 * n * h_out * w_out * (c_in * k * k + c_out * c_in)
    bytes_accessed = (x.size * x.dtype.itemsize
                      + n * c_out * h_out * w_out * x.dtype.itemsize)

    out_flat = pl.pallas_call(
        kernel,
        out_shape=jax.ShapeDtypeStruct((n, c_out, h_out * w_out), x.dtype),
        grid_spec=pltpu.PrefetchScalarGridSpec(
            num_scalar_prefetch=0,
            grid=(n, n_tiles),
            in_specs=[
                # One whole (unpadded) sample per sample-step; block index is
                # constant along the h-tile axis so it is DMA'd once.
                pl.BlockSpec((None, c_in, h, w), lambda i, j: (i, 0, 0, 0)),
                # Depthwise taps as SMEM scalars.
                pl.BlockSpec(memory_space=pltpu.MemorySpace.SMEM),
                # Pointwise weights + BN shift in VMEM (MXU / vector operands).
                pl.BlockSpec(memory_space=pltpu.MemorySpace.VMEM),
                pl.BlockSpec(memory_space=pltpu.MemorySpace.VMEM),
            ],
            out_specs=pl.BlockSpec((None, c_out, h_tile * w_out),
                                   lambda i, j: (i, 0, j)),
            scratch_shapes=[
                pltpu.VMEM((c_in, h_pad, w_pad), jnp.float32),
                pltpu.VMEM((c_in, h_tile, w_out), jnp.float32),
            ],
        ),
        compiler_params=pltpu.CompilerParams(
            dimension_semantics=("parallel", "arbitrary"),
        ),
        cost_estimate=pl.CostEstimate(
            flops=flops, transcendentals=0, bytes_accessed=bytes_accessed),
    )(x, w_dw_flat, w_pw_scaled, shift)

    return out_flat.reshape(n, c_out, h_out, w_out)


def dilconv_reference(x, w_dw, w_pw, bn_gamma, bn_beta, bn_mean, bn_var, *,
                      stride, padding, dilation, eps=1e-5):
    """Pure-JAX reference (ReLU -> dilated depthwise -> 1x1 -> BN, NCHW)."""
    c_in = x.shape[1]
    c_out = w_pw.shape[0]
    k = w_dw.shape[-1]
    y = jnp.maximum(x, 0.0)
    y = jax.lax.conv_general_dilated(
        y, w_dw.reshape(c_in, 1, k, k),
        window_strides=(stride, stride),
        padding=[(padding, padding), (padding, padding)],
        rhs_dilation=(dilation, dilation),
        dimension_numbers=("NCHW", "OIHW", "NCHW"),
        feature_group_count=c_in,
        precision=jax.lax.Precision.HIGHEST)
    y = jax.lax.conv_general_dilated(
        y, w_pw.reshape(c_out, c_in, 1, 1),
        window_strides=(1, 1),
        padding=[(0, 0), (0, 0)],
        dimension_numbers=("NCHW", "OIHW", "NCHW"),
        precision=jax.lax.Precision.HIGHEST)
    inv = 1.0 / jnp.sqrt(bn_var + eps)
    scale = (bn_gamma * inv)[None, :, None, None]
    shift = (bn_beta - bn_mean * bn_gamma * inv)[None, :, None, None]
    return y * scale + shift


if __name__ == "__main__":
    key = jax.random.PRNGKey(0)
    keys = jax.random.split(key, 7)
    N, C_IN, C_OUT, H, W = 2, 4, 8, 16, 16
    K = 3

    x = jax.random.normal(keys[0], (N, C_IN, H, W), dtype=jnp.float32)
    w_dw = 0.3 * jax.random.normal(keys[1], (C_IN, K, K), dtype=jnp.float32)
    w_pw = 0.3 * jax.random.normal(keys[2], (C_OUT, C_IN), dtype=jnp.float32)
    gamma = 1.0 + 0.1 * jax.random.normal(keys[3], (C_OUT,), dtype=jnp.float32)
    beta = 0.1 * jax.random.normal(keys[4], (C_OUT,), dtype=jnp.float32)
    mean = 0.1 * jax.random.normal(keys[5], (C_OUT,), dtype=jnp.float32)
    var = jax.random.uniform(keys[6], (C_OUT,), dtype=jnp.float32,
                             minval=0.5, maxval=1.5)

    # Config 1: DARTS dil_conv_3x3, stride=1 (3x3 kernel, dilation=2 -> 5x5 RF).
    out1 = dilconv_forward(x, w_dw, w_pw, gamma, beta, mean, var,
                           kernel_size=K, stride=1, padding=2, dilation=2)
    jax.block_until_ready(out1)
    ref1 = dilconv_reference(x, w_dw, w_pw, gamma, beta, mean, var,
                             stride=1, padding=2, dilation=2)
    assert out1.shape == ref1.shape, (out1.shape, ref1.shape)
    assert jnp.allclose(out1, ref1, atol=1e-3, rtol=1e-3), float(
        jnp.max(jnp.abs(out1 - ref1)))

    # Config 2: reduction-cell variant, stride=2.
    out2 = dilconv_forward(x, w_dw, w_pw, gamma, beta, mean, var,
                           kernel_size=K, stride=2, padding=2, dilation=2)
    jax.block_until_ready(out2)
    ref2 = dilconv_reference(x, w_dw, w_pw, gamma, beta, mean, var,
                             stride=2, padding=2, dilation=2)
    assert out2.shape == ref2.shape, (out2.shape, ref2.shape)
    assert jnp.allclose(out2, ref2, atol=1e-3, rtol=1e-3), float(
        jnp.max(jnp.abs(out2 - ref2)))

    print("KERNEL_OK")
</pallas_src>

<mosaic_0001>
module attributes {stable_mosaic.version = 11 : i64} {
  func.func @_dilconv_kernel(%arg0: i32, %arg1: i32, %arg2: memref<1x4x16x16xf32, #tpu.memory_space<vmem>>, %arg3: memref<36xf32, #tpu.memory_space<smem>>, %arg4: memref<8x4xf32, #tpu.memory_space<vmem>>, %arg5: memref<8x1xf32, #tpu.memory_space<vmem>>, %arg6: memref<1x8x128xf32, #tpu.memory_space<vmem>>, %arg7: memref<4x20x20xf32, #tpu.memory_space<vmem>>, %arg8: memref<4x8x16xf32, #tpu.memory_space<vmem>>) attributes {dimension_semantics = [#tpu.dimension_semantics<parallel>, #tpu.dimension_semantics<arbitrary>], iteration_bounds = array<i64: 2, 2>, scalar_prefetch = 0 : i64, scratch_operands = 2 : i64, tpu.core_type = #tpu.core_type<tc>, window_params = [{transform_indices = @transform_0, window_bounds = array<i64: 1, 4, 16, 16>}, {transform_indices = @transform_1, window_bounds = array<i64: 36>}, {pipeline_mode = #tpu.pipeline_mode<synchronous>, transform_indices = @transform_2, window_bounds = array<i64: 8, 4>}, {pipeline_mode = #tpu.pipeline_mode<synchronous>, transform_indices = @transform_3, window_bounds = array<i64: 8, 1>}, {transform_indices = @transform_4, window_bounds = array<i64: 1, 8, 128>}]} {
    %c0_i32 = arith.constant 0 : i32
    %0 = arith.cmpi eq, %arg1, %c0_i32 : i32
    %1 = arith.extui %0 : i1 to i32
    %c0_i32_0 = arith.constant 0 : i32
    %2 = arith.cmpi ne, %1, %c0_i32_0 : i32
    scf.if %2 {
      %cst_53 = arith.constant 0.000000e+00 : f32
      %295 = vector.broadcast %cst_53 : f32 to vector<4x20x20xf32>
      %c0_54 = arith.constant 0 : index
      %c0_55 = arith.constant 0 : index
      %c0_56 = arith.constant 0 : index
      %296 = vector.load %arg7[%c0_54, %c0_55, %c0_56] : memref<4x20x20xf32, #tpu.memory_space<vmem>>, vector<4x20x20xf32>
      tpu.vector_store %arg7[%c0_54, %c0_55, %c0_56], %295 {strides = array<i32>} : memref<4x20x20xf32, #tpu.memory_space<vmem>>, vector<4x20x20xf32>,
      %c0_57 = arith.constant 0 : index
      %c0_58 = arith.constant 0 : index
      %c0_59 = arith.constant 0 : index
      %c0_60 = arith.constant 0 : index
      %297 = vector.load %arg2[%c0_57, %c0_58, %c0_59, %c0_60] : memref<1x4x16x16xf32, #tpu.memory_space<vmem>>, vector<1x4x16x16xf32>
      %298 = vector.shape_cast %297 : vector<1x4x16x16xf32> to vector<4x16x16xf32>
      %cst_61 = arith.constant 0.000000e+00 : f32
      %299 = vector.broadcast %cst_61 : f32 to vector<4x16x16xf32>
      %300 = arith.maximumf %298, %299 : vector<4x16x16xf32>
      %c0_62 = arith.constant 0 : index
      %c2 = arith.constant 2 : index
      %c2_63 = arith.constant 2 : index
      %301 = vector.load %arg7[%c0_62, %c2, %c2_63] : memref<4x20x20xf32, #tpu.memory_space<vmem>>, vector<4x16x16xf32>
      tpu.vector_store %arg7[%c0_62, %c2, %c2_63], %300 {strides = array<i32>} : memref<4x20x20xf32, #tpu.memory_space<vmem>>, vector<4x16x16xf32>,
    } else {
    }
    %c8_i32 = arith.constant 8 : i32
    %3 = arith.muli %arg1, %c8_i32 : i32
    %4 = tpu.assume_multiple %3, 8 : i32
    %c0_i32_1 = arith.constant 0 : i32
    %5 = arith.index_cast %c0_i32_1 : i32 to index
    %6 = arith.index_cast %4 : i32 to index
    %c0 = arith.constant 0 : index
    %7 = vector.load %arg7[%5, %6, %c0] : memref<4x20x20xf32, #tpu.memory_space<vmem>>, vector<1x12x20xf32>
    %8 = vector.shape_cast %7 : vector<1x12x20xf32> to vector<12x20xf32>
    %9 = vector.extract_strided_slice %8 {offsets = [0, 0], sizes = [8, 16], strides = [1, 1]} : vector<12x20xf32> to vector<8x16xf32>
    %c0_i32_2 = arith.constant 0 : i32
    %10 = arith.addi %c0_i32_2, %c0_i32_1 : i32
    %11 = arith.index_cast %10 : i32 to index
    %12 = memref.load %arg3[%11] : memref<36xf32, #tpu.memory_space<smem>>
    %13 = vector.broadcast %12 : f32 to vector<8x16xf32>
    %14 = arith.mulf %9, %13 : vector<8x16xf32>
    %15 = vector.extract_strided_slice %8 {offsets = [0, 2], sizes = [8, 16], strides = [1, 1]} : vector<12x20xf32> to vector<8x16xf32>
    %c4_i32 = arith.constant 4 : i32
    %16 = arith.addi %c4_i32, %c0_i32_1 : i32
    %17 = arith.index_cast %16 : i32 to index
    %18 = memref.load %arg3[%17] : memref<36xf32, #tpu.memory_space<smem>>
    %19 = vector.broadcast %18 : f32 to vector<8x16xf32>
    %20 = arith.mulf %15, %19 : vector<8x16xf32>
    %21 = arith.addf %14, %20 : vector<8x16xf32>
    %22 = vector.extract_strided_slice %8 {offsets = [0, 4], sizes = [8, 16], strides = [1, 1]} : vector<12x20xf32> to vector<8x16xf32>
    %c8_i32_3 = arith.constant 8 : i32
    %23 = arith.addi %c8_i32_3, %c0_i32_1 : i32
    %24 = arith.index_cast %23 : i32 to index
    %25 = memref.load %arg3[%24] : memref<36xf32, #tpu.memory_space<smem>>
    %26 = vector.broadcast %25 : f32 to vector<8x16xf32>
    %27 = arith.mulf %22, %26 : vector<8x16xf32>
    %28 = arith.addf %21, %27 : vector<8x16xf32>
    %29 = vector.extract_strided_slice %8 {offsets = [2, 0], sizes = [8, 16], strides = [1, 1]} : vector<12x20xf32> to vector<8x16xf32>
    %c12_i32 = arith.constant 12 : i32
    %30 = arith.addi %c12_i32, %c0_i32_1 : i32
    %31 = arith.index_cast %30 : i32 to index
    %32 = memref.load %arg3[%31] : memref<36xf32, #tpu.memory_space<smem>>
    %33 = vector.broadcast %32 : f32 to vector<8x16xf32>
    %34 = arith.mulf %29, %33 : vector<8x16xf32>
    %35 = arith.addf %28, %34 : vector<8x16xf32>
    %36 = vector.extract_strided_slice %8 {offsets = [2, 2], sizes = [8, 16], strides = [1, 1]} : vector<12x20xf32> to vector<8x16xf32>
    %c16_i32 = arith.constant 16 : i32
    %37 = arith.addi %c16_i32, %c0_i32_1 : i32
    %38 = arith.index_cast %37 : i32 to index
    %39 = memref.load %arg3[%38] : memref<36xf32, #tpu.memory_space<smem>>
    %40 = vector.broadcast %39 : f32 to vector<8x16xf32>
    %41 = arith.mulf %36, %40 : vector<8x16xf32>
    %42 = arith.addf %35, %41 : vector<8x16xf32>
    %43 = vector.extract_strided_slice %8 {offsets = [2, 4], sizes = [8, 16], strides = [1, 1]} : vector<12x20xf32> to vector<8x16xf32>
    %c20_i32 = arith.constant 20 : i32
    %44 = arith.addi %c20_i32, %c0_i32_1 : i32
    %45 = arith.index_cast %44 : i32 to index
    %46 = memref.load %arg3[%45] : memref<36xf32, #tpu.memory_space<smem>>
    %47 = vector.broadcast %46 : f32 to vector<8x16xf32>
    %48 = arith.mulf %43, %47 : vector<8x16xf32>
    %49 = arith.addf %42, %48 : vector<8x16xf32>
    %50 = vector.extract_strided_slice %8 {offsets = [4, 0], sizes = [8, 16], strides = [1, 1]} : vector<12x20xf32> to vector<8x16xf32>
    %c24_i32 = arith.constant 24 : i32
    %51 = arith.addi %c24_i32, %c0_i32_1 : i32
    %52 = arith.index_cast %51 : i32 to index
    %53 = memref.load %arg3[%52] : memref<36xf32, #tpu.memory_space<smem>>
    %54 = vector.broadcast %53 : f32 to vector<8x16xf32>
    %55 = arith.mulf %50, %54 : vector<8x16xf32>
    %56 = arith.addf %49, %55 : vector<8x16xf32>
    %57 = vector.extract_strided_slice %8 {offsets = [4, 2], sizes = [8, 16], strides = [1, 1]} : vector<12x20xf32> to vector<8x16xf32>
    %c28_i32 = arith.constant 28 : i32
    %58 = arith.addi %c28_i32, %c0_i32_1 : i32
    %59 = arith.index_cast %58 : i32 to index
    %60 = memref.load %arg3[%59] : memref<36xf32, #tpu.memory_space<smem>>
    %61 = vector.broadcast %60 : f32 to vector<8x16xf32>
    %62 = arith.mulf %57, %61 : vector<8x16xf32>
    %63 = arith.addf %56, %62 : vector<8x16xf32>
    %64 = vector.extract_strided_slice %8 {offsets = [4, 4], sizes = [8, 16], strides = [1, 1]} : vector<12x20xf32> to vector<8x16xf32>
    %c32_i32 = arith.constant 32 : i32
    %65 = arith.addi %c32_i32, %c0_i32_1 : i32
    %66 = arith.index_cast %65 : i32 to index
    %67 = memref.load %arg3[%66] : memref<36xf32, #tpu.memory_space<smem>>
    %68 = vector.broadcast %67 : f32 to vector<8x16xf32>
    %69 = arith.mulf %64, %68 : vector<8x16xf32>
    %70 = arith.addf %63, %69 : vector<8x16xf32>
    %71 = arith.index_cast %c0_i32_1 : i32 to index
    %c0_4 = arith.constant 0 : index
    %c0_5 = arith.constant 0 : index
    %72 = vector.load %arg8[%71, %c0_4, %c0_5] : memref<4x8x16xf32, #tpu.memory_space<vmem>>, vector<1x8x16xf32>
    %73 = vector.shape_cast %72 : vector<1x8x16xf32> to vector<8x16xf32>
    %74 = vector.shape_cast %70 : vector<8x16xf32> to vector<1x8x16xf32>
    tpu.vector_store %arg8[%71, %c0_4, %c0_5], %74 {strides = array<i32>} : memref<4x8x16xf32, #tpu.memory_space<vmem>>, vector<1x8x16xf32>,
    %c1_i32 = arith.constant 1 : i32
    %75 = arith.index_cast %c1_i32 : i32 to index
    %76 = arith.index_cast %4 : i32 to index
    %c0_6 = arith.constant 0 : index
    %77 = vector.load %arg7[%75, %76, %c0_6] : memref<4x20x20xf32, #tpu.memory_space<vmem>>, vector<1x12x20xf32>
    %78 = vector.shape_cast %77 : vector<1x12x20xf32> to vector<12x20xf32>
    %79 = vector.extract_strided_slice %78 {offsets = [0, 0], sizes = [8, 16], strides = [1, 1]} : vector<12x20xf32> to vector<8x16xf32>
    %c0_i32_7 = arith.constant 0 : i32
    %80 = arith.addi %c0_i32_7, %c1_i32 : i32
    %81 = arith.index_cast %80 : i32 to index
    %82 = memref.load %arg3[%81] : memref<36xf32, #tpu.memory_space<smem>>
    %83 = vector.broadcast %82 : f32 to vector<8x16xf32>
    %84 = arith.mulf %79, %83 : vector<8x16xf32>
    %85 = vector.extract_strided_slice %78 {offsets = [0, 2], sizes = [8, 16], strides = [1, 1]} : vector<12x20xf32> to vector<8x16xf32>
    %c4_i32_8 = arith.constant 4 : i32
    %86 = arith.addi %c4_i32_8, %c1_i32 : i32
    %87 = arith.index_cast %86 : i32 to index
    %88 = memref.load %arg3[%87] : memref<36xf32, #tpu.memory_space<smem>>
    %89 = vector.broadcast %88 : f32 to vector<8x16xf32>
    %90 = arith.mulf %85, %89 : vector<8x16xf32>
    %91 = arith.addf %84, %90 : vector<8x16xf32>
    %92 = vector.extract_strided_slice %78 {offsets = [0, 4], sizes = [8, 16], strides = [1, 1]} : vector<12x20xf32> to vector<8x16xf32>
    %c8_i32_9 = arith.constant 8 : i32
    %93 = arith.addi %c8_i32_9, %c1_i32 : i32
    %94 = arith.index_cast %93 : i32 to index
    %95 = memref.load %arg3[%94] : memref<36xf32, #tpu.memory_space<smem>>
    %96 = vector.broadcast %95 : f32 to vector<8x16xf32>
    %97 = arith.mulf %92, %96 : vector<8x16xf32>
    %98 = arith.addf %91, %97 : vector<8x16xf32>
    %99 = vector.extract_strided_slice %78 {offsets = [2, 0], sizes = [8, 16], strides = [1, 1]} : vector<12x20xf32> to vector<8x16xf32>
    %c12_i32_10 = arith.constant 12 : i32
    %100 = arith.addi %c12_i32_10, %c1_i32 : i32
    %101 = arith.index_cast %100 : i32 to index
    %102 = memref.load %arg3[%101] : memref<36xf32, #tpu.memory_space<smem>>
    %103 = vector.broadcast %102 : f32 to vector<8x16xf32>
    %104 = arith.mulf %99, %103 : vector<8x16xf32>
    %105 = arith.addf %98, %104 : vector<8x16xf32>
    %106 = vector.extract_strided_slice %78 {offsets = [2, 2], sizes = [8, 16], strides = [1, 1]} : vector<12x20xf32> to vector<8x16xf32>
    %c16_i32_11 = arith.constant 16 : i32
    %107 = arith.addi %c16_i32_11, %c1_i32 : i32
    %108 = arith.index_cast %107 : i32 to index
    %109 = memref.load %arg3[%108] : memref<36xf32, #tpu.memory_space<smem>>
    %110 = vector.broadcast %109 : f32 to vector<8x16xf32>
    %111 = arith.mulf %106, %110 : vector<8x16xf32>
    %112 = arith.addf %105, %111 : vector<8x16xf32>
    %113 = vector.extract_strided_slice %78 {offsets = [2, 4], sizes = [8, 16], strides = [1, 1]} : vector<12x20xf32> to vector<8x16xf32>
    %c20_i32_12 = arith.constant 20 : i32
    %114 = arith.addi %c20_i32_12, %c1_i32 : i32
    %115 = arith.index_cast %114 : i32 to index
    %116 = memref.load %arg3[%115] : memref<36xf32, #tpu.memory_space<smem>>
    %117 = vector.broadcast %116 : f32 to vector<8x16xf32>
    %118 = arith.mulf %113, %117 : vector<8x16xf32>
    %119 = arith.addf %112, %118 : vector<8x16xf32>
    %120 = vector.extract_strided_slice %78 {offsets = [4, 0], sizes = [8, 16], strides = [1, 1]} : vector<12x20xf32> to vector<8x16xf32>
    %c24_i32_13 = arith.constant 24 : i32
    %121 = arith.addi %c24_i32_13, %c1_i32 : i32
    %122 = arith.index_cast %121 : i32 to index
    %123 = memref.load %arg3[%122] : memref<36xf32, #tpu.memory_space<smem>>
    %124 = vector.broadcast %123 : f32 to vector<8x16xf32>
    %125 = arith.mulf %120, %124 : vector<8x16xf32>
    %126 = arith.addf %119, %125 : vector<8x16xf32>
    %127 = vector.extract_strided_slice %78 {offsets = [4, 2], sizes = [8, 16], strides = [1, 1]} : vector<12x20xf32> to vector<8x16xf32>
    %c28_i32_14 = arith.constant 28 : i32
    %128 = arith.addi %c28_i32_14, %c1_i32 : i32
    %129 = arith.index_cast %128 : i32 to index
    %130 = memref.load %arg3[%129] : memref<36xf32, #tpu.memory_space<smem>>
    %131 = vector.broadcast %130 : f32 to vector<8x16xf32>
    %132 = arith.mulf %127, %131 : vector<8x16xf32>
    %133 = arith.addf %126, %132 : vector<8x16xf32>
    %134 = vector.extract_strided_slice %78 {offsets = [4, 4], sizes = [8, 16], strides = [1, 1]} : vector<12x20xf32> to vector<8x16xf32>
    %c32_i32_15 = arith.constant 32 : i32
    %135 = arith.addi %c32_i32_15, %c1_i32 : i32
    %136 = arith.index_cast %135 : i32 to index
    %137 = memref.load %arg3[%136] : memref<36xf32, #tpu.memory_space<smem>>
    %138 = vector.broadcast %137 : f32 to vector<8x16xf32>
    %139 = arith.mulf %134, %138 : vector<8x16xf32>
    %140 = arith.addf %133, %139 : vector<8x16xf32>
    %141 = arith.index_cast %c1_i32 : i32 to index
    %c0_16 = arith.constant 0 : index
    %c0_17 = arith.constant 0 : index
    %142 = vector.load %arg8[%141, %c0_16, %c0_17] : memref<4x8x16xf32, #tpu.memory_space<vmem>>, vector<1x8x16xf32>
    %143 = vector.shape_cast %142 : vector<1x8x16xf32> to vector<8x16xf32>
    %144 = vector.shape_cast %140 : vector<8x16xf32> to vector<1x8x16xf32>
    tpu.vector_store %arg8[%141, %c0_16, %c0_17], %144 {strides = array<i32>} : memref<4x8x16xf32, #tpu.memory_space<vmem>>, vector<1x8x16xf32>,
    %c2_i32 = arith.constant 2 : i32
    %145 = arith.index_cast %c2_i32 : i32 to index
    %146 = arith.index_cast %4 : i32 to index
    %c0_18 = arith.constant 0 : index
    %147 = vector.load %arg7[%145, %146, %c0_18] : memref<4x20x20xf32, #tpu.memory_space<vmem>>, vector<1x12x20xf32>
    %148 = vector.shape_cast %147 : vector<1x12x20xf32> to vector<12x20xf32>
    %149 = vector.extract_strided_slice %148 {offsets = [0, 0], sizes = [8, 16], strides = [1, 1]} : vector<12x20xf32> to vector<8x16xf32>
    %c0_i32_19 = arith.constant 0 : i32
    %150 = arith.addi %c0_i32_19, %c2_i32 : i32
    %151 = arith.index_cast %150 : i32 to index
    %152 = memref.load %arg3[%151] : memref<36xf32, #tpu.memory_space<smem>>
    %153 = vector.broadcast %152 : f32 to vector<8x16xf32>
    %154 = arith.mulf %149, %153 : vector<8x16xf32>
    %155 = vector.extract_strided_slice %148 {offsets = [0, 2], sizes = [8, 16], strides = [1, 1]} : vector<12x20xf32> to vector<8x16xf32>
    %c4_i32_20 = arith.constant 4 : i32
    %156 = arith.addi %c4_i32_20, %c2_i32 : i32
    %157 = arith.index_cast %156 : i32 to index
    %158 = memref.load %arg3[%157] : memref<36xf32, #tpu.memory_space<smem>>
    %159 = vector.broadcast %158 : f32 to vector<8x16xf32>
    %160 = arith.mulf %155, %159 : vector<8x16xf32>
    %161 = arith.addf %154, %160 : vector<8x16xf32>
    %162 = vector.extract_strided_slice %148 {offsets = [0, 4], sizes = [8, 16], strides = [1, 1]} : vector<12x20xf32> to vector<8x16xf32>
    %c8_i32_21 = arith.constant 8 : i32
    %163 = arith.addi %c8_i32_21, %c2_i32 : i32
    %164 = arith.index_cast %163 : i32 to index
    %165 = memref.load %arg3[%164] : memref<36xf32, #tpu.memory_space<smem>>
    %166 = vector.broadcast %165 : f32 to vector<8x16xf32>
    %167 = arith.mulf %162, %166 : vector<8x16xf32>
    %168 = arith.addf %161, %167 : vector<8x16xf32>
    %169 = vector.extract_strided_slice %148 {offsets = [2, 0], sizes = [8, 16], strides = [1, 1]} : vector<12x20xf32> to vector<8x16xf32>
    %c12_i32_22 = arith.constant 12 : i32
    %170 = arith.addi %c12_i32_22, %c2_i32 : i32
    %171 = arith.index_cast %170 : i32 to index
    %172 = memref.load %arg3[%171] : memref<36xf32, #tpu.memory_space<smem>>
    %173 = vector.broadcast %172 : f32 to vector<8x16xf32>
    %174 = arith.mulf %169, %173 : vector<8x16xf32>
    %175 = arith.addf %168, %174 : vector<8x16xf32>
    %176 = vector.extract_strided_slice %148 {offsets = [2, 2], sizes = [8, 16], strides = [1, 1]} : vector<12x20xf32> to vector<8x16xf32>
    %c16_i32_23 = arith.constant 16 : i32
    %177 = arith.addi %c16_i32_23, %c2_i32 : i32
    %178 = arith.index_cast %177 : i32 to index
    %179 = memref.load %arg3[%178] : memref<36xf32, #tpu.memory_space<smem>>
    %180 = vector.broadcast %179 : f32 to vector<8x16xf32>
    %181 = arith.mulf %176, %180 : vector<8x16xf32>
    %182 = arith.addf %175, %181 : vector<8x16xf32>
    %183 = vector.extract_strided_slice %148 {offsets = [2, 4], sizes = [8, 16], strides = [1, 1]} : vector<12x20xf32> to vector<8x16xf32>
    %c20_i32_24 = arith.constant 20 : i32
    %184 = arith.addi %c20_i32_24, %c2_i32 : i32
    %185 = arith.index_cast %184 : i32 to index
    %186 = memref.load %arg3[%185] : memref<36xf32, #tpu.memory_space<smem>>
    %187 = vector.broadcast %186 : f32 to vector<8x16xf32>
    %188 = arith.mulf %183, %187 : vector<8x16xf32>
    %189 = arith.addf %182, %188 : vector<8x16xf32>
    %190 = vector.extract_strided_slice %148 {offsets = [4, 0], sizes = [8, 16], strides = [1, 1]} : vector<12x20xf32> to vector<8x16xf32>
    %c24_i32_25 = arith.constant 24 : i32
    %191 = arith.addi %c24_i32_25, %c2_i32 : i32
    %192 = arith.index_cast %191 : i32 to index
    %193 = memref.load %arg3[%192] : memref<36xf32, #tpu.memory_space<smem>>
    %194 = vector.broadcast %193 : f32 to vector<8x16xf32>
    %195 = arith.mulf %190, %194 : vector<8x16xf32>
    %196 = arith.addf %189, %195 : vector<8x16xf32>
    %197 = vector.extract_strided_slice %148 {offsets = [4, 2], sizes = [8, 16], strides = [1, 1]} : vector<12x20xf32> to vector<8x16xf32>
    %c28_i32_26 = arith.constant 28 : i32
    %198 = arith.addi %c28_i32_26, %c2_i32 : i32
    %199 = arith.index_cast %198 : i32 to index
    %200 = memref.load %arg3[%199] : memref<36xf32, #tpu.memory_space<smem>>
    %201 = vector.broadcast %200 : f32 to vector<8x16xf32>
    %202 = arith.mulf %197, %201 : vector<8x16xf32>
    %203 = arith.addf %196, %202 : vector<8x16xf32>
    %204 = vector.extract_strided_slice %148 {offsets = [4, 4], sizes = [8, 16], strides = [1, 1]} : vector<12x20xf32> to vector<8x16xf32>
    %c32_i32_27 = arith.constant 32 : i32
    %205 = arith.addi %c32_i32_27, %c2_i32 : i32
    %206 = arith.index_cast %205 : i32 to index
    %207 = memref.load %arg3[%206] : memref<36xf32, #tpu.memory_space<smem>>
    %208 = vector.broadcast %207 : f32 to vector<8x16xf32>
    %209 = arith.mulf %204, %208 : vector<8x16xf32>
    %210 = arith.addf %203, %209 : vector<8x16xf32>
    %211 = arith.index_cast %c2_i32 : i32 to index
    %c0_28 = arith.constant 0 : index
    %c0_29 = arith.constant 0 : index
    %212 = vector.load %arg8[%211, %c0_28, %c0_29] : memref<4x8x16xf32, #tpu.memory_space<vmem>>, vector<1x8x16xf32>
    %213 = vector.shape_cast %212 : vector<1x8x16xf32> to vector<8x16xf32>
    %214 = vector.shape_cast %210 : vector<8x16xf32> to vector<1x8x16xf32>
    tpu.vector_store %arg8[%211, %c0_28, %c0_29], %214 {strides = array<i32>} : memref<4x8x16xf32, #tpu.memory_space<vmem>>, vector<1x8x16xf32>,
    %c3_i32 = arith.constant 3 : i32
    %215 = arith.index_cast %c3_i32 : i32 to index
    %216 = arith.index_cast %4 : i32 to index
    %c0_30 = arith.constant 0 : index
    %217 = vector.load %arg7[%215, %216, %c0_30] : memref<4x20x20xf32, #tpu.memory_space<vmem>>, vector<1x12x20xf32>
    %218 = vector.shape_cast %217 : vector<1x12x20xf32> to vector<12x20xf32>
    %219 = vector.extract_strided_slice %218 {offsets = [0, 0], sizes = [8, 16], strides = [1, 1]} : vector<12x20xf32> to vector<8x16xf32>
    %c0_i32_31 = arith.constant 0 : i32
    %220 = arith.addi %c0_i32_31, %c3_i32 : i32
    %221 = arith.index_cast %220 : i32 to index
    %222 = memref.load %arg3[%221] : memref<36xf32, #tpu.memory_space<smem>>
    %223 = vector.broadcast %222 : f32 to vector<8x16xf32>
    %224 = arith.mulf %219, %223 : vector<8x16xf32>
    %225 = vector.extract_strided_slice %218 {offsets = [0, 2], sizes = [8, 16], strides = [1, 1]} : vector<12x20xf32> to vector<8x16xf32>
    %c4_i32_32 = arith.constant 4 : i32
    %226 = arith.addi %c4_i32_32, %c3_i32 : i32
    %227 = arith.index_cast %226 : i32 to index
    %228 = memref.load %arg3[%227] : memref<36xf32, #tpu.memory_space<smem>>
    %229 = vector.broadcast %228 : f32 to vector<8x16xf32>
    %230 = arith.mulf %225, %229 : vector<8x16xf32>
    %231 = arith.addf %224, %230 : vector<8x16xf32>
    %232 = vector.extract_strided_slice %218 {offsets = [0, 4], sizes = [8, 16], strides = [1, 1]} : vector<12x20xf32> to vector<8x16xf32>
    %c8_i32_33 = arith.constant 8 : i32
    %233 = arith.addi %c8_i32_33, %c3_i32 : i32
    %234 = arith.index_cast %233 : i32 to index
    %235 = memref.load %arg3[%234] : memref<36xf32, #tpu.memory_space<smem>>
    %236 = vector.broadcast %235 : f32 to vector<8x16xf32>
    %237 = arith.mulf %232, %236 : vector<8x16xf32>
    %238 = arith.addf %231, %237 : vector<8x16xf32>
    %239 = vector.extract_strided_slice %218 {offsets = [2, 0], sizes = [8, 16], strides = [1, 1]} : vector<12x20xf32> to vector<8x16xf32>
    %c12_i32_34 = arith.constant 12 : i32
    %240 = arith.addi %c12_i32_34, %c3_i32 : i32
    %241 = arith.index_cast %240 : i32 to index
    %242 = memref.load %arg3[%241] : memref<36xf32, #tpu.memory_space<smem>>
    %243 = vector.broadcast %242 : f32 to vector<8x16xf32>
    %244 = arith.mulf %239, %243 : vector<8x16xf32>
    %245 = arith.addf %238, %244 : vector<8x16xf32>
    %246 = vector.extract_strided_slice %218 {offsets = [2, 2], sizes = [8, 16], strides = [1, 1]} : vector<12x20xf32> to vector<8x16xf32>
    %c16_i32_35 = arith.constant 16 : i32
    %247 = arith.addi %c16_i32_35, %c3_i32 : i32
    %248 = arith.index_cast %247 : i32 to index
    %249 = memref.load %arg3[%248] : memref<36xf32, #tpu.memory_space<smem>>
    %250 = vector.broadcast %249 : f32 to vector<8x16xf32>
    %251 = arith.mulf %246, %250 : vector<8x16xf32>
    %252 = arith.addf %245, %251 : vector<8x16xf32>
    %253 = vector.extract_strided_slice %218 {offsets = [2, 4], sizes = [8, 16], strides = [1, 1]} : vector<12x20xf32> to vector<8x16xf32>
    %c20_i32_36 = arith.constant 20 : i32
    %254 = arith.addi %c20_i32_36, %c3_i32 : i32
    %255 = arith.index_cast %254 : i32 to index
    %256 = memref.load %arg3[%255] : memref<36xf32, #tpu.memory_space<smem>>
    %257 = vector.broadcast %256 : f32 to vector<8x16xf32>
    %258 = arith.mulf %253, %257 : vector<8x16xf32>
    %259 = arith.addf %252, %258 : vector<8x16xf32>
    %260 = vector.extract_strided_slice %218 {offsets = [4, 0], sizes = [8, 16], strides = [1, 1]} : vector<12x20xf32> to vector<8x16xf32>
    %c24_i32_37 = arith.constant 24 : i32
    %261 = arith.addi %c24_i32_37, %c3_i32 : i32
    %262 = arith.index_cast %261 : i32 to index
    %263 = memref.load %arg3[%262] : memref<36xf32, #tpu.memory_space<smem>>
    %264 = vector.broadcast %263 : f32 to vector<8x16xf32>
    %265 = arith.mulf %260, %264 : vector<8x16xf32>
    %266 = arith.addf %259, %265 : vector<8x16xf32>
    %267 = vector.extract_strided_slice %218 {offsets = [4, 2], sizes = [8, 16], strides = [1, 1]} : vector<12x20xf32> to vector<8x16xf32>
    %c28_i32_38 = arith.constant 28 : i32
    %268 = arith.addi %c28_i32_38, %c3_i32 : i32
    %269 = arith.index_cast %268 : i32 to index
    %270 = memref.load %arg3[%269] : memref<36xf32, #tpu.memory_space<smem>>
    %271 = vector.broadcast %270 : f32 to vector<8x16xf32>
    %272 = arith.mulf %267, %271 : vector<8x16xf32>
    %273 = arith.addf %266, %272 : vector<8x16xf32>
    %274 = vector.extract_strided_slice %218 {offsets = [4, 4], sizes = [8, 16], strides = [1, 1]} : vector<12x20xf32> to vector<8x16xf32>
    %c32_i32_39 = arith.constant 32 : i32
    %275 = arith.addi %c32_i32_39, %c3_i32 : i32
    %276 = arith.index_cast %275 : i32 to index
    %277 = memref.load %arg3[%276] : memref<36xf32, #tpu.memory_space<smem>>
    %278 = vector.broadcast %277 : f32 to vector<8x16xf32>
    %279 = arith.mulf %274, %278 : vector<8x16xf32>
    %280 = arith.addf %273, %279 : vector<8x16xf32>
    %281 = arith.index_cast %c3_i32 : i32 to index
    %c0_40 = arith.constant 0 : index
    %c0_41 = arith.constant 0 : index
    %282 = vector.load %arg8[%281, %c0_40, %c0_41] : memref<4x8x16xf32, #tpu.memory_space<vmem>>, vector<1x8x16xf32>
    %283 = vector.shape_cast %282 : vector<1x8x16xf32> to vector<8x16xf32>
    %284 = vector.shape_cast %280 : vector<8x16xf32> to vector<1x8x16xf32>
    tpu.vector_store %arg8[%281, %c0_40, %c0_41], %284 {strides = array<i32>} : memref<4x8x16xf32, #tpu.memory_space<vmem>>, vector<1x8x16xf32>,
    %c4_i32_42 = arith.constant 4 : i32
    %c0_43 = arith.constant 0 : index
    %c0_44 = arith.constant 0 : index
    %c0_45 = arith.constant 0 : index
    %285 = vector.load %arg8[%c0_43, %c0_44, %c0_45] : memref<4x8x16xf32, #tpu.memory_space<vmem>>, vector<4x8x16xf32>
    %286 = vector.shape_cast %285 : vector<4x8x16xf32> to vector<4x128xf32>
    %c0_46 = arith.constant 0 : index
    %c0_47 = arith.constant 0 : index
    %287 = vector.load %arg4[%c0_46, %c0_47] : memref<8x4xf32, #tpu.memory_space<vmem>>, vector<8x4xf32>
    %cst = arith.constant dense<0.000000e+00> : vector<8x128xf32>
    %288 = tpu.matmul %287, %286, %cst {dimension_numbers = #tpu.dot_dimension_numbers<[1], [0], [0], [1], [0, 0, 1, 1], [], []>} : vector<8x4xf32>, vector<4x128xf32>, vector<8x128xf32> -> vector<8x128xf32>
    %c0_48 = arith.constant 0 : index
    %c0_49 = arith.constant 0 : index
    %289 = vector.load %arg5[%c0_48, %c0_49] : memref<8x1xf32, #tpu.memory_space<vmem>>, vector<8x1xf32>
    %290 = vector.broadcast %289 : vector<8x1xf32> to vector<8x128xf32>
    %291 = arith.addf %288, %290 : vector<8x128xf32>
    %c0_50 = arith.constant 0 : index
    %c0_51 = arith.constant 0 : index
    %c0_52 = arith.constant 0 : index
    %292 = vector.load %arg6[%c0_50, %c0_51, %c0_52] : memref<1x8x128xf32, #tpu.memory_space<vmem>>, vector<1x8x128xf32>
    %293 = vector.shape_cast %292 : vector<1x8x128xf32> to vector<8x128xf32>
    %294 = vector.shape_cast %291 : vector<8x128xf32> to vector<1x8x128xf32>
    tpu.vector_store %arg6[%c0_50, %c0_51, %c0_52], %294 {strides = array<i32>} : memref<1x8x128xf32, #tpu.memory_space<vmem>>, vector<1x8x128xf32>,
    return
  }
  func.func @transform_0(%arg0: i32, %arg1: i32) -> (i32, i32, i32, i32) {
    %c0_i32 = arith.constant 0 : i32
    %c0_i32_0 = arith.constant 0 : i32
    %c0_i32_1 = arith.constant 0 : i32
    %c0_i32_2 = arith.constant 0 : i32
    return %arg0, %c0_i32, %c0_i32_0, %c0_i32_1 : i32, i32, i32, i32
  }
  func.func @transform_1(%arg0: i32, %arg1: i32) -> i32 {
    %c0_i32 = arith.constant 0 : i32
    %c0_i32_0 = arith.constant 0 : i32
    return %c0_i32 : i32
  }
  func.func @transform_2(%arg0: i32, %arg1: i32) -> (i32, i32) {
    %c0_i32 = arith.constant 0 : i32
    %c0_i32_0 = arith.constant 0 : i32
    %c0_i32_1 = arith.constant 0 : i32
    return %c0_i32, %c0_i32_0 : i32, i32
  }
  func.func @transform_3(%arg0: i32, %arg1: i32) -> (i32, i32) {
    %c0_i32 = arith.constant 0 : i32
    %c0_i32_0 = arith.constant 0 : i32
    %c0_i32_1 = arith.constant 0 : i32
    return %c0_i32, %c0_i32_0 : i32, i32
  }
  func.func @transform_4(%arg0: i32, %arg1: i32) -> (i32, i32, i32) {
    %c0_i32 = arith.constant 0 : i32
    %c0_i32_0 = arith.constant 0 : i32
    return %arg0, %c0_i32, %arg1 : i32, i32, i32
  }
}

</mosaic_0001>

<bundles_post_ra>
// kernel: tpu_custom_call.1
= control target key start
LH: loop header
LB: loop body
LE: loop exit
PB: predicated region body
PF: predicated region fallthrough
CT: control target
= control target key end

     0   :  { %s1948_s0 = inlined_call_operand.hbm [shape: f32[2,4,16,16], index: 0, kind: input, shape index: {}]   ;;  %s1949_s1 = inlined_call_operand.vmem [shape: f32[36], index: 1, kind: input, shape index: {}]   ;;  %s1950_s2 = inlined_call_operand.vmem [shape: f32[8,4], index: 2, kind: input, shape index: {}]   ;;  %s1951_s3 = inlined_call_operand.vmem [shape: f32[8,1], index: 3, kind: input, shape index: {}]   ;;  %s1952_s4 = inlined_call_operand.hbm [shape: f32[2,8,256], index: 4, kind: output, shape index: {}]  }
   0x1   :  { %1963 = sst [smem:[#allocation17_spill]] %s1949_s1 }
   0x2   :  { %1964 = sst [smem:[#allocation18_spill]] %s1950_s2 }
   0x3   :  { %1965 = sst [smem:[#allocation19_spill]] %s1952_s4 }
   0x4   :  { %9 = vsyncpa [#allocation5], 0 }
   0x5   :  { %11 = vsyncpa [#allocation5 + $0x1], 0 }
   0x6   :  { %12 = vsyncpa [#allocation7], 0 }
   0x7   :  { %13 = vsyncpa [#allocation6], 0 }
   0x8   :  { %15 = vsyncpa [#allocation6 + $0x1], 0  ;;  %s1464_s15 = smov 0   ;;  %s1466_s16 = smov 0  }
   0x9   :  { %s1468_s17 = smov 0   ;;  %s1470_s18 = smov 0  }
   0xa   :  { %s1472_s19 = smov 0   ;;  %s1474_s20 = smov 0  }
   0xb   :  { %s1476_s21 = smov 0   ;;  %s1478_s22 = smov 0  }
   0xc   :  { %s1480_s23 = smov 0   ;;  %s1482_s24 = smov 0  }
   0xd   :  { %s1484_s25 = smov 0  }
   0xe LB: > { %1966 = sst [smem:[#allocation13_spill]] %s1376_s15  ;;  %s1037_s26 = sadd.s32 4294967295, %s1416_s25   ;;  %s1416_s25 = sphi %s1484_s25, %s21_s25   ;;  %s1412_s24 = sphi %s1482_s24, %s1999_s24   ;;  %s1408_s23 = sphi %s1480_s23, %s1998_s23   ;;  %s1404_s22 = sphi %s1478_s22, %s1997_s22   ;;  %s1400_s21 = sphi %s1476_s21, %s1996_s21   ;;  %s1396_s20 = sphi %s1474_s20, %s1995_s20   ;;  %s1392_s19 = sphi %s1472_s19, %s1994_s19   ;;  %s1388_s18 = sphi %s1470_s18, %s1993_s18   ;;  %s1384_s17 = sphi %s1468_s17, %s1992_s17   ;;  %s1380_s16 = sphi %s1466_s16, %s1991_s16   ;;  %s1376_s15 = sphi %s1464_s15, %s1990_s15  }
   0xf   : > { %1967 = sst [smem:[#allocation14_spill]] %s1416_s25  ;;  %s1038_s27 = sadd.s32 4294967294, %s1416_s25  }
  0x10   : > { %p47_p0 = scmp.ne.s32.totalorder %s1396_s20, %s1392_s19  ;;  %p48_p1 = scmp.eq.s32.totalorder %s1416_s25, 0 }
  0x11   : > { %p53_p2 = scmp.ne.s32.totalorder %s1392_s19, %s1388_s18  ;;  %p1524_p3 = scmp.eq.s32.totalorder %s1037_s26, 0 }
  0x12   : > { %p1528_p4 = por %p48_p1, %p47_p0  ;;  %p141_p5 = scmp.ne.s32.totalorder %s1384_s17, %s1380_s16 }
  0x13   : > { %p1536_p6 = por %p1524_p3, %p53_p2  ;;  %p142_p7 = scmp.eq.s32.totalorder %s1037_s26, 3 }
  0x14   : > { %p147_p8 = scmp.ne.s32.totalorder %s1380_s16, %s1376_s15  ;;  %p148_p9 = scmp.eq.s32.totalorder %s1038_s27, 3 }
  0x15   : > { %s1970_s5 = scalar_select %p1536_p6, 1, 0 }
  0x16   : > { %p1542_p10 = por %p142_p7, %p141_p5  ;;  %p1039_p11 = scmp.ge.s32.totalorder %s1416_s25, 1 }
  0x17   : > { %p1547_p12 = por %p148_p9, %p147_p8  ;;  %p155_p13 = scmp.lt.s32.totalorder %s1416_s25, 5 }
  0x18   : > { %s1971_s6 = scalar_select %p1542_p10, 1, 0 }
  0x19   : > { %s1973_s7 = scalar_select %p1547_p12, 1, 0 }
  0x1a   : > { %1972 = sst [smem:[#allocation15_spill]] %s1971_s6  ;;  %p1555_p0 = pnand %p1039_p11, %p155_p13 }
  0x1b   : > { %1974 = sst [smem:[#allocation16_spill]] %s1973_s7  ;;  %p1131_p2 = scmp.lt.s32.totalorder %s1416_s25, 4 }
  0x1c   : > { %s1975_s1 = sld [smem:[#allocation17_spill]]  ;;  %p1118_p1 = pneg %p1555_p0 }
  0x1d   : > { %s1976_s11 = scalar_select %p1555_p0, 1, 0 }
  0x1e   : > { %p1119_p5 = pnand %p1118_p1, %p1524_p3  ;;  %p1566_p7 = pnand %p1131_p2, %p1528_p4 }
  0x20   : > { %p1251_p9 = pneg %p1119_p5 }
  0x22   : > { %s168_s10 = sshll.u32 %s1975_s1, 4  ;;  %s169_s10 = int_to_ptr.vmem [resolvable:$true] %s168_s10 }
  0x23   : > { %s1249_s13 = scalar_lea.vmem %s169_s10, 16  ;;  %p1257_p13 = scmp.lt.s32.totalorder %s169_s10, %s169_s10 }
  0x24   : > { %p1250_p8 = scmp.ne.s32.totalorder %s169_s10, %s1249_s13  ;;  %p1258_p10 = scmp.lt.s32.totalorder %s1249_s13, %s1249_s13 }
  0x26   : > { %p1252_p12 = pnand %p1251_p9, %p1250_p8  ;;  %p1259_p6 = por %p1258_p10, %p1257_p13 }
  0x28   : > { %p1253_p11 = pneg %p1252_p12 }
  0x2a   : > { %p1260_p0 = pnand %p1259_p6, %p1253_p11 }
  0x2c   : > { %1263 = shalt.err (!%p1260_p0)
}
  0x2d   : > { %s1418_s14 = smov [#allocation8]   ;;  %s30_s18 = sadd.s32 1, %s1408_s23 }
  0x2e   : > { %1121 = dma.vmem_to_smem (!%p1119_p5), %s169_s10, 16, %s1418_s14, [#allocation7]  }
  0x2f   : > { %s33_s26 = sadd.s32 1, %s1412_s24  ;;  %p31_p4 = scmp.ge.s32.totalorder %s30_s18, 2 }
  0x30   : > { %s185_s27 = sand.u32 1, %s1396_s20   ;;  %s131_s30 = sadd.s32 1, %s1384_s17 }
  0x31   : > { %s1042_s8 = sshll.u32 %s185_s27, 6  ;;  %s2001_s18 = smov (%p31_p4, %s30_s18), 0 }
  0x32   : > { %s2003_s26 = smov (!%p31_p4, %s33_s26), %s1412_s24  ;;  %s1102_s9 = sshll.u32 %s1412_s24, 10 }
  0x33   : > { %p35_p6 = scmp.ge.s32.totalorder %s2003_s26, 2  ;;  %s127_s13 = ssub.s32 %s1408_s23, %s2001_s18 }
  0x34   : > { %s189_s28 = scalar_lea.vmem [#allocation4], %s1042_s8  ;;  %s1585_s7 = scalar_lea.hbm %s1948_s0, %s1102_s9 }
  0x35   : > { %s196_s10 = sshll.u32 %s189_s28, 4  ;;  %s2005_s26 = smov (%p35_p6, %s2003_s26), 0  ;;  %s197_s10 = int_to_ptr.vmem [resolvable:$true] %s196_s10 }
  0x36   : > { %s37_s15 = ssub.s32 %s1412_s24, %s2005_s26  ;;  %s1978_s4 = sadd.s32 1, %s1396_s20 }
  0x37   : > { %p38_p10 = scmp.eq.s32.totalorder %s37_s15, 0  ;;  %s128_s25 = sor.u32 %s127_s13, %s37_s15 }
  0x38   : > { %p129_p12 = scmp.eq.s32.totalorder %s128_s25, 0  ;;  %s186_s8 = scalar_lea.sflag [#allocation5], %s185_s27 }
  0x39   : > { %s1592_s6 = scalar_select %p38_p10, %s1396_s20, %s1978_s4  }
  0x3a   : > { %s1595_s2 = scalar_select %p129_p12, %s1384_s17, %s131_s30  }
  0x3b   : > { %p1266_p0 = pneg %p1566_p7  ;;  %s1277_s28 = scalar_lea.vmem %s197_s10, 1024 }
  0x3c   : > { %p1278_p1 = scmp.ne.s32.totalorder %s197_s10, %s1277_s28  ;;  %s1419_s1 = smov [#allocation4]  }
  0x3d   : > { %s1282_s9 = sshll.u32 %s1419_s1, 4  ;;  %s1283_s9 = int_to_ptr.vmem [resolvable:$false] %s1282_s9 }
  0x3e   : > { %p1280_p2 = pnand %p1278_p1, %p1266_p0  ;;  %s1284_s14 = scalar_lea.vmem %s1283_s9, 2048 }
  0x3f   : > { %p1285_p8 = scmp.lt.s32.totalorder %s197_s10, %s1283_s9  ;;  %p1286_p9 = scmp.lt.s32.totalorder %s1284_s14, %s1277_s28 }
  0x40   : > { %p1281_p5 = pneg %p1280_p2 }
  0x41   : > { %p1287_p11 = por %p1286_p9, %p1285_p8 }
  0x43   : > { %p1288_p13 = pnand %p1287_p11, %p1281_p5 }
  0x45   : > { %1291 = shalt.err (!%p1288_p13)
}
  0x46   : > { %s1420_s4 = smov 128   ;;  %s1421_s15 = smov 8  }
  0x47   : > { %1125 = dma.hbm_to_vmem [thread:$0]  (!%p1566_p7), %s1585_s7, 1024, %s197_s10, %s186_s8, %s1420_s4, %s1420_s4, %s1421_s15  }
  0x48   : > { %p1979_p4 = scmp.ne.s32.totalorder %s1976_s11, 0 }
  0x49   : > { %s210_s25 = sand.u32 (!%p1979_p4), 1, %s1392_s19   ;;  %p1980_p6 = scmp.ne.s32.totalorder (!%p1979_p4), %s1970_s5, 0 }
  0x4a   : > { %208 = sbr.rel (%p1979_p4) target bundleno = 746 (0x2ea), region = 36  ;;  %s1046_s27 = sshll.u32 (!%p1979_p4), %s210_s25, 6 }
  0x4b   : > { %s211_s30 = scalar_lea.sflag (!%p1979_p4), [#allocation5], %s210_s25  ;;  %s1605_s13 = scalar_lea.vmem (!%p1979_p4), [#allocation4], %s1046_s27 }
  0x4f   : > { %1363 = dma.done.wait (%p1980_p6), %s211_s30, 1024  }
  0x50   : > { %1365 = vsyncadd (%p1980_p6), %s211_s30, 4294966272 }
  0x51   : > { %1367 = dma.done.wait (%p1524_p3), [#allocation7], 16  }
  0x52   : > { %1369 = vsyncadd (%p1524_p3), [#allocation7], 4294967280 }
  0x53   : > { %223 = sfence }
  0x54   : > { %s241_s7 = sand.u32 1, %s1380_s16   ;;  %p1049_p7 = scmp.ne.s32.totalorder %s1400_s21, 0 }
  0x55   : > { %s1618_s11 = sshll.u32 %s241_s7, 3  ;;  %s1422_s29 = smov (!%p1049_p7), 2  }
  0x56   : > { %s243_s12 = scalar_lea.vmem [#allocation9], %s1618_s11  ;;  %247 = sbr.rel (%p1049_p7) target bundleno = 222 (0xde), region = 48 }
  0x5b   : > { %v264_v0 = vld [vmem:[%s1605_s13 + $0x10] sm:$0xff]  ;;  %v262_v1 = vld [vmem:[%s1605_s13] sm:$0xff]  ;;  %v265_v2 = vld [vmem:[%s1605_s13 + $0x18] sm:$0xff]  ;;  %vm248_vm0 = vcmask 162816   ;;  %v1423_v8 = vmov 0.0   ;;  %vm251_vm1 = vcmask 158720  }
  0x5c   : > { %v272_v3 = vmax.f32 %v264_v0, 0.0  ;;  %v270_v4 = vmax.f32 %v262_v1, 0.0  ;;  %v263_v5 = vld [vmem:[%s1605_s13 + $0x8] sm:$0xff]  ;;  %v273_v6 = vmax.f32 %v265_v2, 0.0  ;;  %253 = vst.msk [vmem:[#allocation2 + $0x18] sm:$0xff] %vm248_vm0, %v1423_v8  ;;  %254 = vst.msk [vmem:[#allocation2 + $0x20] sm:$0xff] %vm248_vm0, %v1423_v8 }
  0x5d   : > { %v271_v7 = vmax.f32 %v263_v5, 0.0  ;;  %249 = vst.msk [vmem:[#allocation2] sm:$0xff] %vm248_vm0, %v1423_v8  ;;  %250 = vst.msk [vmem:[#allocation2 + $0x8] sm:$0xff] %vm248_vm0, %v1423_v8  ;;  %v267_v9 = vld [vmem:[%s1605_s13 + $0x28] sm:$0xff]  ;;  %v266_v10 = vld [vmem:[%s1605_s13 + $0x20] sm:$0xff]  ;;  %vm310_vm2 = vcmask 146448  }
  0x5e   : > { %290 = vrot.lane.b32.xlu1 %v272_v3, %s1422_s29  ;;  %286 = vrot.lane.b32.xlu0 %v270_v4, %s1422_s29  ;;  %256 = vst.msk [vmem:[#allocation2 + $0x30] sm:$0xff] %vm248_vm0, %v1423_v8  ;;  %257 = vst.msk [vmem:[#allocation2 + $0x38] sm:$0xff] %vm248_vm0, %v1423_v8  ;;  %v275_v11 = vmax.f32 %v267_v9, 0.0  ;;  %v274_v12 = vmax.f32 %v266_v10, 0.0  ;;  %v269_v13 = vld [vmem:[%s1605_s13 + $0x38] sm:$0xff]  ;;  %v268_v14 = vld [vmem:[%s1605_s13 + $0x30] sm:$0xff] }
  0x5f   : > { %259 = vst.msk [vmem:[#allocation2 + $0x48] sm:$0xff] %vm248_vm0, %v1423_v8  ;;  %260 = vst.msk [vmem:[#allocation2 + $0x50] sm:$0xff] %vm248_vm0, %v1423_v8  ;;  %v277_v15 = vmax.f32 %v269_v13, 0.0  ;;  %v276_v16 = vmax.f32 %v268_v14, 0.0 }
  0x60   : > { %255 = vst.msk [vmem:[#allocation2 + $0x28] sm:$0xf] %vm251_vm1, %v1423_v8  ;;  %252 = vst.msk [vmem:[#allocation2 + $0x10] sm:$0xf] %vm251_vm1, %v1423_v8 }
  0x61   : > { %258 = vst.msk [vmem:[#allocation2 + $0x40] sm:$0xf] %vm251_vm1, %v1423_v8  ;;  %261 = vst.msk [vmem:[#allocation2 + $0x58] sm:$0xf] %vm251_vm1, %v1423_v8 }
  0x62   : > { %292 = vrot.lane.b32.xlu1 %v273_v6, %s1422_s29  ;;  %288 = vrot.lane.b32.xlu0 %v271_v7, %s1422_s29 }
  0x66   : > { %296 = vrot.lane.b32.xlu1 %v275_v11, %s1422_s29  ;;  %294 = vrot.lane.b32.xlu0 %v274_v12, %s1422_s29 }
  0x6a   : > { %300 = vrot.lane.b32.xlu1 %v277_v15, %s1422_s29  ;;  %298 = vrot.lane.b32.xlu0 %v276_v16, %s1422_s29 }
  0xd0   : > { %v291_v17 = vpop.permute.xlu1 %290  ;;  %v287_v18 = vpop.permute.xlu0 %286 }
  0xd1   : > { %313 = vst.msk [vmem:[#allocation2 + $0x1a] sm:$0xff] %vm310_vm2, %v291_v17  ;;  %311 = vst.msk [vmem:[#allocation2 + $0x2] sm:$0xff] %vm310_vm2, %v287_v18 }
  0xd4   : > { %v293_v19 = vpop.permute.xlu1 %292  ;;  %v289_v20 = vpop.permute.xlu0 %288 }
  0xd5   : > { %314 = vst.msk [vmem:[#allocation2 + $0x22] sm:$0xff] %vm310_vm2, %v293_v19  ;;  %312 = vst.msk [vmem:[#allocation2 + $0xa] sm:$0xff] %vm310_vm2, %v289_v20 }
  0xd8   : > { %v297_v21 = vpop.permute.xlu1 %296  ;;  %v295_v22 = vpop.permute.xlu0 %294 }
  0xd9   : > { %316 = vst.msk [vmem:[#allocation2 + $0x3a] sm:$0xff] %vm310_vm2, %v297_v21  ;;  %315 = vst.msk [vmem:[#allocation2 + $0x32] sm:$0xff] %vm310_vm2, %v295_v22 }
  0xdc   : > { %v301_v23 = vpop.permute.xlu1 %300  ;;  %v299_v24 = vpop.permute.xlu0 %298 }
  0xdd   : > { %318 = vst.msk [vmem:[#allocation2 + $0x52] sm:$0xff] %vm310_vm2, %v301_v23  ;;  %317 = vst.msk [vmem:[#allocation2 + $0x4a] sm:$0xff] %vm310_vm2, %v299_v24 }
  0xde PF: > { %s1050_s5 = sshll.u32 %s1400_s21, 3  ;;  %s1075_s10 = sld [smem:[#allocation8 + $0x6]]  ;;  %vm348_vm3 = vcmask 1045504   ;;  %vm386_vm4 = vcmask 1043456   ;;  %vm418_vm5 = vcmask 130048   ;;  %vm1431_vm6 = vmmov 0  }
  0xdf   : > { %s1051_s8 = sld [smem:[#allocation8 + $0x4]]  ;;  %s1655_s9 = scalar_lea.vmem [#allocation2], %s1050_s5  ;;  %vm818_vm7 = vcmask 261120   ;;  %vm820_vm8 = vcmask 392192   ;;  %vm822_vm9 = vcmask 523264   ;;  %vm824_vm10 = vcmask 654336  }
  0xe0   : > { %s1087_s28 = sld [smem:[#allocation8 + $0x7]]  ;;  %s1424_s30 = smov 126   ;;  %vm826_vm11 = vcmask 785408   ;;  %vm828_vm12 = vcmask 916480   ;;  %vm837_vm13 = vcmask 31744  }
  0xe1   : > { %s1063_s1 = sld [smem:[#allocation8 + $0x5]] }
  0xe2   : > { %s1064_s14 = sld [smem:[#allocation8 + $0x9]] }
  0xe3   : > { %s1663_s4 = sld [smem:[#allocation8 + $0x8]] }
  0xe4   : > { %v1658_v25 = vld [vmem:[%s1655_s9 + $0x30] sm:$0xff]  ;;  %v1661_v26 = vld [vmem:[%s1655_s9] sm:$0xff]  ;;  %v527_v27 = vstv %s1075_s10  ;;  %v1666_v28 = vld [vmem:[%s1655_s9 + $0x48] sm:$0xff]  ;;  %s1668_s15 = sld [smem:[#allocation8 + $0xb]] }
  0xe5   : > { %v528_v29 = vmul.f32 %v1658_v25, %v527_v27  ;;  %v327_v30 = vstv %s1051_s8  ;;  %v1672_v31 = vld [vmem:[%s1655_s9 + $0x18] sm:$0xff]  ;;  %s1674_s25 = sld [smem:[#allocation8 + $0xa]]  ;;  %v1688_v40 = vld [vmem:[%s1655_s9 + $0x20] sm:$0xf]  ;;  %v1696_v43 = vld [vmem:[%s1655_s9 + $0x8] sm:$0xf] }
  0xe6   : > { %v328_v32 = vmul.f32 %v327_v30, %v1661_v26  ;;  %v626_v33 = vstv %s1087_s28  ;;  %s1066_s27 = sld [smem:[#allocation8 + $0x11]]  ;;  %v1703_v46 = vld [vmem:[%s1655_s9 + $0x50] sm:$0xf]  ;;  %v1722_v59 = vld [vmem:[%s1655_s9 + $0x38] sm:$0xf] }
  0xe7   : > { %530 = vrot.lane.b32.xlu1 %v528_v29, %s1424_s30  ;;  %v627_v34 = vmul.f32 %v1666_v28, %v626_v33  ;;  %v428_v35 = vstv %s1063_s1  ;;  %s1054_s13 = sld [smem:[#allocation8 + $0x10]] }
  0xe8   : > { %330 = vrot.lane.b32.xlu0 %v328_v32, %s1424_s30  ;;  %v429_v36 = vmul.f32 %v1672_v31, %v428_v35  ;;  %v436_v37 = vstv %s1064_s14  ;;  %s1681_s29 = sld [smem:[#allocation8 + $0x13]] }
  0xe9   : > { %v335_v38 = vstv %s1663_s4  ;;  %s1684_s5 = sld [smem:[#allocation8 + $0x12]]  ;;  %v437_v41 = vmul.f32 %v1672_v31, %v436_v37  ;;  %s1425_s4 = smov 124  }
  0xea   : > { %v634_v39 = vstv %s1668_s15  ;;  %s1690_s10 = sld [smem:[#allocation8 + $0x15]]  ;;  %v336_v44 = vmul.f32 %v335_v38, %v1661_v26 }
  0xeb   : > { %629 = vrot.lane.b32.xlu1 %v627_v34, %s1424_s30  ;;  %v535_v42 = vstv %s1674_s25  ;;  %s1698_s8 = sld [smem:[#allocation8 + $0x14]]  ;;  %v635_v47 = vmul.f32 %v1666_v28, %v634_v39 }
  0xec   : > { %431 = vrot.lane.b32.xlu0 %v429_v36, %s1424_s30  ;;  %v455_v45 = vstv %s1066_s27  ;;  %s1705_s28 = sld [smem:[#allocation8 + $0x17]]  ;;  %v536_v51 = vmul.f32 %v1658_v25, %v535_v42 }
  0xed   : > { %v456_v48 = vmul.f32 %v1672_v31, %v455_v45  ;;  %v457_v49 = vmul.f32 %v1688_v40, %v455_v45  ;;  %v355_v50 = vstv %s1054_s13  ;;  %s1710_s1 = sld [smem:[#allocation8 + $0x16]] }
  0xee   : > { %v356_v52 = vmul.f32 %v355_v50, %v1661_v26  ;;  %v357_v53 = vmul.f32 %v355_v50, %v1696_v43  ;;  %v653_v54 = vstv %s1681_s29  ;;  %s1716_s14 = sld [smem:[#allocation8 + $0x1d]] }
  0xef   : > { %439 = vrot.lane.b32.xlu1 %v437_v41, %s1425_s4  ;;  %v460_v55 = vrot.slane %v456_v48, 2  ;;  %v461_v56 = vrot.slane %v457_v49, 2  ;;  %v654_v57 = vmul.f32 %v1666_v28, %v653_v54  ;;  %v655_v58 = vmul.f32 %v1703_v46, %v653_v54  ;;  %s1724_s15 = sld [smem:[#allocation8 + $0x1c]] }
  0xf0   : > { %338 = vrot.lane.b32.xlu0 %v336_v44, %s1425_s4  ;;  %v360_v60 = vrot.slane %v356_v52, 2  ;;  %v361_v61 = vrot.slane %v357_v53, 2  ;;  %v554_v62 = vstv %s1684_s5  ;;  %v468_v63 = vstv %s1690_s10  ;;  %s1729_s25 = sld [smem:[#allocation8 + $0x1f]] }
  0xf1   : > { %v658_v0 = vrot.slane %v654_v57, 2  ;;  %v555_v1 = vmul.f32 %v1658_v25, %v554_v62  ;;  %v659_v2 = vrot.slane %v655_v58, 2  ;;  %v556_v3 = vmul.f32 %v1722_v59, %v554_v62  ;;  %s1739_s9 = sld [smem:[#allocation8 + $0x1e]] }
  0xf2   : > { %v469_v4 = vmul.f32 %v1672_v31, %v468_v63  ;;  %v470_v5 = vmul.f32 %v1688_v40, %v468_v63  ;;  %v462_v6 = vsel %vm348_vm3, %v460_v55, %v461_v56  ;;  %v368_v7 = vstv %s1698_s8  ;;  %s1748_s27 = sld [smem:[#allocation8 + $0x21]] }
  0xf3   : > { %637 = vrot.lane.b32.xlu1 %v635_v47, %s1425_s4  ;;  %v666_v8 = vstv %s1705_s28  ;;  %v362_v9 = vsel %vm348_vm3, %v360_v60, %v361_v61  ;;  %v559_v10 = vrot.slane %v555_v1, 2  ;;  %v560_v11 = vrot.slane %v556_v3, 2  ;;  %s1754_s13 = sld [smem:[#allocation8 + $0x20]] }
  0xf4   : > { %538 = vrot.lane.b32.xlu0 %v536_v51, %s1425_s4  ;;  %v369_v12 = vmul.f32 %v368_v7, %v1661_v26  ;;  %v370_v13 = vmul.f32 %v368_v7, %v1696_v43  ;;  %v667_v14 = vmul.f32 %v1666_v28, %v666_v8  ;;  %v668_v15 = vmul.f32 %v1703_v46, %v666_v8  ;;  %s1760_s29 = sld [smem:[#allocation8 + $0x23]] }
  0xf5   : > { %v567_v16 = vstv %s1710_s1  ;;  %v660_v17 = vsel %vm348_vm3, %v658_v0, %v659_v2  ;;  %v473_v18 = vrot.slane %v469_v4, 2  ;;  %v474_v19 = vrot.slane %v470_v5, 2  ;;  %s1763_s5 = sld [smem:[#allocation8 + $0x22]] }
  0xf6   : > { %v568_v20 = vmul.f32 %v1658_v25, %v567_v16  ;;  %v373_v21 = vrot.slane %v369_v12, 2  ;;  %v374_v22 = vrot.slane %v370_v13, 2  ;;  %v671_v23 = vrot.slane %v667_v14, 2  ;;  %s1781_s10 = sld [smem:[#allocation8 + $0xd]] }
  0xf7   : > { %463 = vrot.lane.b32.xlu1 %v462_v6, %s1424_s30  ;;  %v569_v24 = vmul.f32 %v1722_v59, %v567_v16  ;;  %v672_v27 = vrot.slane %v668_v15, 2  ;;  %v492_v29 = vstv %s1716_s14  ;;  %v393_v30 = vstv %s1724_s15  ;;  %s1785_s8 = sld [smem:[#allocation8 + $0xc]] }
  0xf8   : > { %363 = vrot.lane.b32.xlu0 %v362_v9, %s1424_s30  ;;  %v690_v32 = vstv %s1729_s25  ;;  %v561_v33 = vsel %vm348_vm3, %v559_v10, %v560_v11  ;;  %v572_v34 = vrot.slane %v568_v20, 2  ;;  %v493_v36 = vmul.f32 %v1672_v31, %v492_v29  ;;  %s1792_s28 = sld [smem:[#allocation8 + $0xf]] }
  0xf9   : > { %v573_v35 = vrot.slane %v569_v24, 2  ;;  %v494_v37 = vmul.f32 %v1688_v40, %v492_v29  ;;  %v394_v38 = vmul.f32 %v393_v30, %v1661_v26  ;;  %v395_v39 = vmul.f32 %v393_v30, %v1696_v43  ;;  %s1796_s1 = sld [smem:[#allocation8 + $0xe]] }
  0xfa   : > { %v691_v41 = vmul.f32 %v1666_v28, %v690_v32  ;;  %v591_v42 = vstv %s1739_s9  ;;  %v475_v44 = vsel %vm348_vm3, %v473_v18, %v474_v19  ;;  %v375_v45 = vsel %vm348_vm3, %v373_v21, %v374_v22  ;;  %s1803_s14 = sld [smem:[#allocation8 + $0x19]] }
  0xfb   : > { %661 = vrot.lane.b32.xlu1 %v660_v17, %s1424_s30  ;;  %v673_v47 = vsel %vm348_vm3, %v671_v23, %v672_v27  ;;  %v692_v48 = vmul.f32 %v1703_v46, %v690_v32  ;;  %v574_v49 = vsel %vm348_vm3, %v572_v34, %v573_v35  ;;  %v592_v50 = vmul.f32 %v1658_v25, %v591_v42  ;;  %s1810_s15 = sld [smem:[#allocation8 + $0x18]] }
  0xfc   : > { %562 = vrot.lane.b32.xlu0 %v561_v33, %s1424_s30  ;;  %v593_v51 = vmul.f32 %v1722_v59, %v591_v42  ;;  %v505_v52 = vstv %s1748_s27  ;;  %v497_v53 = vrot.slane %v493_v36, 4  ;;  %v498_v54 = vrot.slane %v494_v37, 4  ;;  %s1816_s25 = sld [smem:[#allocation8 + $0x1b]] }
  0xfd   : > { %v506_v55 = vmul.f32 %v1672_v31, %v505_v52  ;;  %v507_v56 = vmul.f32 %v1688_v40, %v505_v52  ;;  %v398_v57 = vrot.slane %v394_v38, 4  ;;  %v399_v58 = vrot.slane %v395_v39, 4  ;;  %s1826_s9 = sld [smem:[#allocation8 + $0x1a]] }
  0xfe   : > { %v695_v60 = vrot.slane %v691_v41, 4  ;;  %v406_v61 = vstv %s1754_s13  ;;  %v696_v62 = vrot.slane %v692_v48, 4  ;;  %v596_v63 = vrot.slane %v592_v50, 4  ;;  %s323_s27 = sld [smem:[#allocation8]] }
  0xff   : > { %476 = vrot.lane.b32.xlu1 %v475_v44, %s1425_s4  ;;  %v407_v0 = vmul.f32 %v406_v61, %v1661_v26  ;;  %v408_v1 = vmul.f32 %v406_v61, %v1696_v43  ;;  %v597_v2 = vrot.slane %v593_v51, 4  ;;  %v510_v3 = vrot.slane %v506_v55, 4  ;;  %s1086_s13 = sld [smem:[#allocation8 + $0x3]] }
 0x100   : > { %376 = vrot.lane.b32.xlu0 %v375_v45, %s1425_s4  ;;  %v703_v4 = vstv %s1760_s29  ;;  %v604_v5 = vstv %s1763_s5  ;;  %v511_v6 = vrot.slane %v507_v56, 4  ;;  %v499_v13 = vsel %vm386_vm4, %v497_v53, %v498_v54  ;;  %s1074_s29 = sld [smem:[#allocation8 + $0x2]]  ;;  %s1430_s5 = smov 16  }
 0x101   : > { %v411_v7 = vrot.slane %v407_v0, 4  ;;  %v412_v8 = vrot.slane %v408_v1, 4  ;;  %v704_v9 = vmul.f32 %v1666_v28, %v703_v4  ;;  %v705_v10 = vmul.f32 %v1703_v46, %v703_v4 }
 0x102   : > { %v605_v11 = vmul.f32 %v1658_v25, %v604_v5  ;;  %v606_v12 = vmul.f32 %v1722_v59, %v604_v5  ;;  %v400_v15 = vsel %vm386_vm4, %v398_v57, %v399_v58  ;;  %v697_v16 = vsel %vm386_vm4, %v695_v60, %v696_v62 }
 0x103   : > { %674 = vrot.lane.b32.xlu1 %v673_v47, %s1425_s4  ;;  %v708_v14 = vrot.slane %v704_v9, 4  ;;  %v598_v17 = vsel %vm386_vm4, %v596_v63, %v597_v2  ;;  %v709_v18 = vrot.slane %v705_v10, 4  ;;  %v512_v19 = vsel %vm386_vm4, %v510_v3, %v511_v6 }
 0x104   : > { %575 = vrot.lane.b32.xlu0 %v574_v49, %s1425_s4  ;;  %v413_v20 = vsel %vm386_vm4, %v411_v7, %v412_v8  ;;  %v444_v21 = vstv %s1781_s10  ;;  %v343_v22 = vstv %s1785_s8  ;;  %v609_v24 = vrot.slane %v605_v11, 4  ;;  %s1432_s10 = smov 64   ;;  %s1434_s8 = smov 48  }
 0x105   : > { %v710_v23 = vsel %vm386_vm4, %v708_v14, %v709_v18  ;;  %v610_v27 = vrot.slane %v606_v12, 4  ;;  %v445_v29 = vmul.f32 %v1672_v31, %v444_v21  ;;  %v446_v30 = vmul.f32 %v1688_v40, %v444_v21 }
 0x106   : > { %v344_v32 = vmul.f32 %v343_v22, %v1661_v26  ;;  %v345_v33 = vmul.f32 %v343_v22, %v1696_v43  ;;  %v642_v34 = vstv %s1792_s28  ;;  %v543_v38 = vstv %s1796_s1  ;;  %s1435_s28 = smov 96   ;;  %s1983_s1 = sld [smem:[#allocation19_spill]] }
 0x107   : > { %500 = vrot.lane.b32.xlu1 %v499_v13, %s1424_s30  ;;  %v449_v35 = vrot.slane %v445_v29, 2  ;;  %v643_v36 = vmul.f32 %v1666_v28, %v642_v34  ;;  %v644_v37 = vmul.f32 %v1703_v46, %v642_v34  ;;  %v450_v39 = vrot.slane %v446_v30, 2 }
 0x108   : > { %401 = vrot.lane.b32.xlu0 %v400_v15, %s1424_s30  ;;  %v349_v41 = vrot.slane %v344_v32, 2  ;;  %v350_v42 = vrot.slane %v345_v33, 2  ;;  %v544_v44 = vmul.f32 %v1658_v25, %v543_v38  ;;  %v545_v48 = vmul.f32 %v1722_v59, %v543_v38 }
 0x109   : > { %v647_v45 = vrot.slane %v643_v36, 2  ;;  %v648_v47 = vrot.slane %v644_v37, 2  ;;  %v481_v49 = vstv %s1803_s14  ;;  %v451_v50 = vsel %vm348_vm3, %v449_v35, %v450_v39 }
 0x10a   : > { %v351_v51 = vsel %vm348_vm3, %v349_v41, %v350_v42  ;;  %v548_v52 = vrot.slane %v544_v44, 2  ;;  %v482_v53 = vmul.f32 %v1672_v31, %v481_v49  ;;  %v549_v55 = vrot.slane %v545_v48, 2 }
 0x10b   : > { %698 = vrot.lane.b32.xlu1 %v697_v16, %s1424_s30  ;;  %v649_v54 = vsel %vm348_vm3, %v647_v45, %v648_v47  ;;  %v483_v56 = vmul.f32 %v1688_v40, %v481_v49  ;;  %v381_v57 = vstv %s1810_s15  ;;  %v679_v62 = vstv %s1816_s25  ;;  %s1436_s15 = smov 80   ;;  %s1437_s25 = smov 112  }
 0x10c   : > { %599 = vrot.lane.b32.xlu0 %v598_v17, %s1424_s30  ;;  %v486_v58 = vrot.slane %v482_v53, 4  ;;  %v382_v60 = vmul.f32 %v381_v57, %v1661_v26  ;;  %v383_v61 = vmul.f32 %v381_v57, %v1696_v43  ;;  %v550_v63 = vsel %vm348_vm3, %v548_v52, %v549_v55  ;;  %s1062_s30 = sld [smem:[#allocation8 + $0x1]] }
 0x10d   : > { %v487_v0 = vrot.slane %v483_v56, 4  ;;  %v680_v1 = vmul.f32 %v1666_v28, %v679_v62  ;;  %v681_v2 = vmul.f32 %v1703_v46, %v679_v62  ;;  %v611_v40 = vsel %vm386_vm4, %v609_v24, %v610_v27 }
 0x10e   : > { %v387_v3 = vrot.slane %v382_v60, 4  ;;  %v388_v4 = vrot.slane %v383_v61, 4  ;;  %v580_v5 = vstv %s1826_s9  ;;  %v1426_v14 = vmov 0.0  }
 0x10f   : > { %513 = vrot.lane.b32.xlu1 %v512_v19, %s1425_s4  ;;  %v488_v6 = vsel %vm386_vm4, %v486_v58, %v487_v0  ;;  %v684_v43 = vrot.slane %v680_v1, 4  ;;  %v685_v7 = vrot.slane %v681_v2, 4  ;;  %v581_v8 = vmul.f32 %v1658_v25, %v580_v5  ;;  %1105 = vmatprep.subr.mxu0 %v1426_v14 }
 0x110   : > { %414 = vrot.lane.b32.xlu0 %v413_v20, %s1425_s4  ;;  %v389_v9 = vsel %vm386_vm4, %v387_v3, %v388_v4  ;;  %v582_v10 = vmul.f32 %v1722_v59, %v580_v5  ;;  %v324_v59 = vstv %s323_s27  ;;  %v623_v20 = vstv %s1086_s13  ;;  %1107 = vmatprep.mubr.msk.f32.mxu0 %vm1431_vm6, %v1426_v14  ;;  %s1981_s27 = sld [smem:[#allocation18_spill]] }
 0x111   : > { %v686_v46 = vsel %vm386_vm4, %v684_v43, %v685_v7  ;;  %v585_v11 = vrot.slane %v581_v8, 4  ;;  %v325_v19 = vmul.f32 %v324_v59, %v1661_v26  ;;  %v524_v22 = vstv %s1074_s29  ;;  %s1982_s13 = sld [smem:[#allocation15_spill]]  ;;  %s1098_s29 = sshll.u32 %s1404_s22, 1 }
 0x112   : > { %v586_v12 = vrot.slane %v582_v10, 4  ;;  %v425_v16 = vstv %s1062_s30  ;;  %v624_v24 = vmul.f32 %v1666_v28, %v623_v20  ;;  %v525_v29 = vmul.f32 %v1658_v25, %v524_v22 }
 0x113   : > { %711 = vrot.lane.b32.xlu1 %v710_v23, %s1425_s4  ;;  %v426_v18 = vmul.f32 %v1672_v31, %v425_v16  ;;  %v1428_v20 = vmov 1934713408  }
 0x114   : > { %612 = vrot.lane.b32.xlu0 %v611_v40, %s1425_s4  ;;  %v587_v13 = vsel %vm386_vm4, %v585_v11, %v586_v12  ;;  %s1429_s4 = smov 32  }
 0x117   : > { %p1984_p10 = scmp.ne.s32.totalorder %s1982_s13, 0 }
 0x159   : > { %v531_v15 = vpop.permute.xlu1 %530 }
 0x15a   : > { %v331_v17 = vpop.permute.xlu0 %330  ;;  %v533_v38 = vadd.f32 %v531_v15, %v525_v29 }
 0x15b   : > { %v333_v30 = vadd.f32 %v331_v17, %v325_v19 }
 0x15d   : > { %v630_v21 = vpop.permute.xlu1 %629 }
 0x15e   : > { %v432_v23 = vpop.permute.xlu0 %431  ;;  %v632_v36 = vadd.f32 %v630_v21, %v624_v24  ;;  %v756_v21 = vunpack.c.l.s4 %v1428_v20 }
 0x15f   : > { %v434_v27 = vadd.f32 %v432_v23, %v426_v18 }
 0x160   : > { %v757_v23 = vunpack.c.0.s8 %v756_v21 }
 0x161   : > { %v440_v32 = vpop.permute.xlu1 %439 }
 0x162   : > { %v442_v33 = vadd.f32 %v440_v32, %v434_v27  ;;  %v339_v34 = vpop.permute.xlu0 %338 }
 0x163   : > { %v341_v35 = vadd.f32 %v339_v34, %v333_v30 }
 0x164   : > { %v453_v37 = vadd.f32 %v451_v50, %v442_v33 }
 0x165   : > { %v638_v31 = vpop.permute.xlu1 %637  ;;  %v353_v39 = vadd.f32 %v351_v51, %v341_v35 }
 0x166   : > { %v640_v26 = vadd.f32 %v638_v31, %v632_v36  ;;  %v539_v41 = vpop.permute.xlu0 %538 }
 0x167   : > { %v541_v42 = vadd.f32 %v539_v41, %v533_v38 }
 0x168   : > { %v651_v44 = vadd.f32 %v649_v54, %v640_v26 }
 0x169   : > { %v464_v45 = vpop.permute.xlu1 %463  ;;  %v552_v47 = vadd.f32 %v550_v63, %v541_v42 }
 0x16a   : > { %v364_v28 = vpop.permute.xlu0 %363  ;;  %v466_v25 = vadd.f32 %v464_v45, %v453_v37 }
 0x16b   : > { %v366_v52 = vadd.f32 %v364_v28, %v353_v39 }
 0x16d   : > { %v662_v48 = vpop.permute.xlu1 %661 }
 0x16e   : > { %v563_v49 = vpop.permute.xlu0 %562  ;;  %v664_v58 = vadd.f32 %v662_v48, %v651_v44 }
 0x16f   : > { %v565_v60 = vadd.f32 %v563_v49, %v552_v47  ;;  %v1433_v47 = vmov 0   ;;  %v831_v49 = vld [vmem:[%s1951_s3] sm:$0xff] }
 0x170   : > { %1242 = vset.pattern.permute.xlu0 %v1433_v47  ;;  %1241 = vset.pattern.permute.xlu1 %v1433_v47 }
 0x171   : > { %v477_v53 = vpop.permute.xlu1 %476 }
 0x172   : > { %v479_v55 = vadd.f32 %v477_v53, %v466_v25  ;;  %v377_v56 = vpop.permute.xlu0 %376 }
 0x173   : > { %v379_v57 = vadd.f32 %v377_v56, %v366_v52 }
 0x174   : > { %v490_v50 = vadd.f32 %v488_v6, %v479_v55 }
 0x175   : > { %v675_v61 = vpop.permute.xlu1 %674  ;;  %v391_v51 = vadd.f32 %v389_v9, %v379_v57 }
 0x176   : > { %v677_v62 = vadd.f32 %v675_v61, %v664_v58  ;;  %v576_v0 = vpop.permute.xlu0 %575 }
 0x177   : > { %v578_v1 = vadd.f32 %v576_v0, %v565_v60 }
 0x178   : > { %v688_v54 = vadd.f32 %v686_v46, %v677_v62  ;;  %v1427_v46 = vmov 1983009808  }
 0x179   : > { %v501_v2 = vpop.permute.xlu1 %500  ;;  %v589_v63 = vadd.f32 %v587_v13, %v578_v1  ;;  %v724_v15 = vunpack.c.l.s4 %v1427_v46  ;;  %v726_v13 = vlaneseq  ;;  %v830_v1 = vld [vmem:[%s1981_s27] sm:$0xff] }
 0x17a   : > { %v402_v40 = vpop.permute.xlu0 %401  ;;  %v503_v5 = vadd.f32 %v501_v2, %v490_v50 }
 0x17b   : > { %v404_v43 = vadd.f32 %v402_v40, %v391_v51  ;;  %v725_v18 = vunpack.c.0.s8 %v724_v15  ;;  %v727_v19 = vshrl.u32 %v726_v13, 7 }
 0x17d   : > { %v699_v3 = vpop.permute.xlu1 %698  ;;  %v728_v22 = vsub.s32 %v725_v18, %v727_v19  ;;  %v760_v34 = vsub.s32 %v757_v23, %v727_v19 }
 0x17e   : > { %v600_v4 = vpop.permute.xlu0 %599  ;;  %v701_v6 = vadd.f32 %v699_v3, %v688_v54 }
 0x17f   : > { %v602_v9 = vadd.f32 %v600_v4, %v589_v63 }
 0x181   : > { %v514_v7 = vpop.permute.xlu1 %513 }
 0x182   : > { %v516_v8 = vadd.f32 %v514_v7, %v503_v5  ;;  %v415_v10 = vpop.permute.xlu0 %414 }
 0x183   : > { %v417_v11 = vadd.f32 %v415_v10, %v404_v43 }
 0x184   : > { %518 = vst.msk [vmem:[#allocation3 + $0x8] sm:$0xff] %vm418_vm5, %v516_v8 }
 0x185   : > { %419 = vst.msk [vmem:[#allocation3] sm:$0xff] %vm418_vm5, %v417_v11  ;;  %v712_v12 = vpop.permute.xlu1 %711 }
 0x186   : > { %v714_v16 = vadd.f32 %v712_v12, %v701_v6  ;;  %v613_v59 = vpop.permute.xlu0 %612 }
 0x187   : > { %v615_v17 = vadd.f32 %v613_v59, %v602_v9 }
 0x188   : > { %716 = vst.msk [vmem:[#allocation3 + $0x18] sm:$0xff] %vm418_vm5, %v714_v16 }
 0x189   : > { %617 = vst.msk [vmem:[#allocation3 + $0x10] sm:$0xff] %vm418_vm5, %v615_v17 }
 0x18f   : > { %v1245_v24 = vld [vmem:[#allocation3 + $0x8] ss:$16 sps:$4 sm:$0xff]   ;;  %v1248_v27 = vld [vmem:[#allocation3 + $0xc] ss:$16 sps:$4 sm:$0xff]  }
 0x190   : > { %v1243_v29 = vld [vmem:[#allocation3] ss:$16 sps:$4 sm:$0xff]   ;;  %v1247_v30 = vld [vmem:[#allocation3 + $0x4] ss:$16 sps:$4 sm:$0xff]   ;;  %v745_v32 = vrot.slane %v1245_v24, %v728_v22  ;;  %v752_v36 = vrot.slane %v1248_v27, %v728_v22 }
 0x191   : > { %v729_v33 = vrot.slane %v1243_v29, %v728_v22  ;;  %v736_v35 = vrot.slane %v1247_v30, %v728_v22 }
 0x193   : > { %v754_v37 = vcombine.high %v729_v33, %v745_v32  ;;  %v753_v38 = vcombine.low %v729_v33, %v745_v32  ;;  %v769_v26 = vcombine.low %v736_v35, %v752_v36  ;;  %v770_v44 = vcombine.high %v736_v35, %v752_v36 }
 0x195   : > { %v768_v31 = vrot.slane %v754_v37, %v760_v34  ;;  %v761_v39 = vrot.slane %v753_v38, %v760_v34  ;;  %v777_v42 = vrot.slane %v769_v26, %v760_v34  ;;  %v784_v28 = vrot.slane %v770_v44, %v760_v34 }
 0x197   : > { %794 = vrot.lane.b32.xlu1 %v768_v31, %s1429_s4  ;;  %v785_v41 = vcombine.high %v761_v39, %v1426_v14  ;;  %v786_v45 = vcombine.high %v768_v31, %v1426_v14  ;;  %v787_v48 = vcombine.high %v777_v42, %v1426_v14  ;;  %v788_v25 = vcombine.high %v784_v28, %v1426_v14  ;;  %s927_s4 = sadd.s32 %s1400_s21, %s1098_s29  ;;  %s1438_s21 = smov [#allocation9]  }
 0x198   : > { %s1296_s22 = sshll.u32 %s1438_s21, 4  ;;  %s1297_s22 = int_to_ptr.vmem [resolvable:$false] %s1296_s22 }
 0x199   : > { %790 = vrot.lane.b32.xlu0 %v785_v41, %s1430_s5  ;;  %s1099_s5 = sshll.u32 %s927_s4, 7  ;;  %s1298_s9 = scalar_lea.vmem %s1297_s22, 256 }
 0x19a   : > { %s1889_s14 = scalar_lea.hbm %s1983_s1, %s1099_s5 }
 0x19b   : > { %802 = vrot.lane.b32.xlu1 %v777_v42, %s1432_s10  ;;  %s931_s10 = sshll.u32 %s243_s12, 4  ;;  %s932_s10 = int_to_ptr.vmem [resolvable:$true] %s931_s10 }
 0x19c   : > { %p1299_p1 = scmp.lt.s32.totalorder %s932_s10, %s1297_s22 }
 0x19d   : > { %798 = vrot.lane.b32.xlu0 %v786_v45, %s1434_s8 }
 0x19f   : > { %810 = vrot.lane.b32.xlu1 %v784_v28, %s1435_s28 }
 0x1a1   : > { %806 = vrot.lane.b32.xlu0 %v787_v48, %s1436_s15  ;;  %s916_s15 = scalar_lea.sflag [#allocation6], %s241_s7 }
 0x1a3   : > { %834 = vperm.xlu1 %1241, %v831_v49  }
 0x1a5   : > { %814 = vrot.lane.b32.xlu0 %v788_v25, %s1437_s25  ;;  %s1292_s25 = scalar_lea.vmem %s932_s10, 128 }
 0x1a6   : > { %p1293_p3 = scmp.ne.s32.totalorder %s932_s10, %s1292_s25  ;;  %p1300_p2 = scmp.lt.s32.totalorder %s1298_s9, %s1292_s25 }
 0x1a8   : > { %p1294_p12 = pnand %p1293_p3, %p1984_p10  ;;  %p1301_p5 = por %p1300_p2, %p1299_p1 }
 0x1aa   : > { %p1295_p0 = pneg %p1294_p12 }
 0x1ac   : > { %p1302_p8 = pnand %p1301_p5, %p1295_p0 }
 0x209   : > { %v795_v52 = vpop.permute.xlu1 %794 }
 0x20b   : > { %v791_v53 = vpop.permute.xlu0 %790 }
 0x20c   : > { %v817_v55 = vsel %vm418_vm5, %v761_v39, %v791_v53 }
 0x20d   : > { %v819_v56 = vsel %vm818_vm7, %v817_v55, %v795_v52  ;;  %v803_v58 = vpop.permute.xlu1 %802 }
 0x20f   : > { %v799_v57 = vpop.permute.xlu0 %798 }
 0x210   : > { %v821_v50 = vsel %vm820_vm8, %v819_v56, %v799_v57 }
 0x211   : > { %v823_v60 = vsel %vm822_vm9, %v821_v50, %v803_v58  ;;  %v811_v51 = vpop.permute.xlu1 %810 }
 0x213   : > { %v807_v61 = vpop.permute.xlu0 %806 }
 0x214   : > { %v825_v14 = vsel %vm824_vm10, %v823_v60, %v807_v61 }
 0x215   : > { %v827_v0 = vsel %vm826_vm11, %v825_v14, %v811_v51 }
 0x217   : > { %v815_v62 = vpop.permute.xlu0 %814 }
 0x218   : > { %v829_v54 = vsel %vm828_vm12, %v827_v0, %v815_v62 }
 0x219   : > { %1106 = vmatpush3.msk.msra.mxu0 %vm386_vm4, %v829_v54 }
 0x21a   : > { %1108 = vmatmul.mubr.msk.f32.vlgmr.msra.gmra.mxu0 %vm837_vm13, %v830_v1 }
 0x21e   : > { %v835_v2 = vpop.permute.xlu1 %834 }
 0x2da   : > { %v910_v63 = vpop.f32.mrf.mxu0 }
 0x2db   : > { %v911_v40 = vadd.f32 %v910_v63, %v835_v2 }
 0x2dc   : > { %v1109_v3 = vpop.f32.mrf.mxu0 }
 0x2dd   : > { %914 = vst [vmem:[%s243_s12] sm:$0xff] %v911_v40 }
 0x2de   : > { %1305 = shalt.err (!%p1302_p8)
}
 0x2df   : > { %s1306_s11 = scalar_lea.hbm %s1889_s14, 128  ;;  %s1310_s30 = scalar_lea.hbm %s1983_s1, 512 }
 0x2e0   : > { %p1307_p9 = scmp.ne.s32.totalorder %s1889_s14, %s1306_s11  ;;  %p1311_p4 = scmp.lt.s32.totalorder %s1889_s14, %s1983_s1 }
 0x2e1   : > { %p1312_p6 = scmp.lt.s32.totalorder %s1310_s30, %s1306_s11 }
 0x2e2   : > { %p1308_p11 = pnand %p1307_p9, %p1984_p10 }
 0x2e3   : > { %p1313_p7 = por %p1312_p6, %p1311_p4 }
 0x2e4   : > { %p1309_p13 = pneg %p1308_p11 }
 0x2e6   : > { %p1314_p3 = pnand %p1313_p7, %p1309_p13 }
 0x2e8   : > { %1317 = shalt.err (!%p1314_p3)
}
 0x2e9   : > { %1116 = dma.vmem_to_hbm [thread:$0]  (%p1984_p10), %s932_s10, 128, %s1889_s14, %s916_s15  }
 0x2ea PF: > { %s1985_s4 = sld [smem:[#allocation14_spill]] }
 0x2eb   : > { %s1986_s5 = sld [smem:[#allocation13_spill]] }
 0x2ec   : > { %s1987_s8 = sld [smem:[#allocation16_spill]] }
 0x2f0   : > { %p1133_p12 = scmp.ge.s32.totalorder %s1985_s4, 2 }
 0x2f1   : > { %s943_s28 = sand.u32 1, %s1986_s5  }
 0x2f2   : > { %p1988_p0 = scmp.ne.s32.totalorder %s1987_s8, 0  ;;  %s944_s25 = scalar_lea.sflag [#allocation6], %s943_s28 }
 0x2f4   : > { %p1127_p1 = pnand %p1133_p12, %p1988_p0 }
 0x2f6   : > { %p1128_p2 = pneg %p1127_p1 }
 0x2f8   : > { %1371 = dma.done.wait (%p1128_p2), %s944_s25, 128  }
 0x2f9   : > { %1373 = vsyncadd (%p1128_p2), %s944_s25, 4294967168  ;;  %s21_s25 = sadd.s32 1, %s1985_s4   ;;  %s1989_s13 = smov %s2001_s18 }
 0x2fa   : > { %p18_p5 = scmp.ge.s32.totalorder %s21_s25, 6   ;;  %s1990_s15 = smov %s1380_s16 }
 0x2fb   : > { %s1991_s16 = smov %s1384_s17  ;;  %s1992_s17 = smov %s1595_s2 }
 0x2fc   : > { %s1993_s18 = smov %s1392_s19  ;;  %s1994_s19 = smov %s1396_s20 }
 0x2fd   : > { %s1995_s20 = smov %s1592_s6  ;;  %s1996_s21 = smov %s1408_s23 }
 0x2fe   : > { %s1997_s22 = smov %s1412_s24  ;;  %s1998_s23 = smov %s1989_s13 }
 0x2ff   : > { %s1999_s24 = smov %s2005_s26  ;;  %20 = sbr.rel (!%p18_p5) target bundleno = 14 (0xe), region = 97 }
 0x304   :  { %949 = vsyncpa [#allocation5], 1 }
 0x305   :  { %951 = vsyncpa [#allocation5 + $0x1], 1 }
 0x306   :  { %952 = vsyncpa [#allocation6], 1 }
 0x307   :  { %954 = vsyncpa [#allocation6 + $0x1], 1 }
 0x308   :  { %955 = vsyncpa [#allocation7], 1 }
 0x309   :  { %957 = vsyncpa [#allocation7 + $0x1], 1 }

</bundles_post_ra>
